<compile_context>
chip_gen: v7x
topology: tpu7x:2x2x1
jax: 0.10.0
libtpu: 0.0.40
codegen_flags: <defaults>
</compile_context>

<pallas_src>
import functools

import jax
import jax.numpy as jnp
from jax.experimental import pallas as pl
from jax.experimental.pallas import tpu as pltpu

# ---- problem sizes (small, consistent with a seq2seq forward) ----
B = 2          # batch
S = 8          # source sequence length
T = 4          # target sequence length (teacher forcing)
E = 16         # embedding dim
H = 32         # GRU hidden dim
V_DE = 32      # source (de) vocab
V_EN = 32      # target (en) vocab
V_PAD = 128    # lane-dense padded vocab width for the output slab
BOS_ID = 1     # de.bos_id
_NEG = -1e30   # bias for padded vocab columns -> exp underflows to exactly 0

_VMEM = pl.BlockSpec(memory_space=pltpu.MemorySpace.VMEM)


# ---------------------------------------------------------------------------
# Shared GRU gate math (PyTorch nn.GRU semantics; b_hn is folded into gh,
# so n = tanh(gi_n + r * (W_hn h + b_hn)) exactly as in torch).
# ---------------------------------------------------------------------------
def _gru_gates(gi_t, gh, h, hdim):
  r = jax.nn.sigmoid(gi_t[:, :hdim] + gh[:, :hdim])
  z = jax.nn.sigmoid(gi_t[:, hdim:2 * hdim] + gh[:, hdim:2 * hdim])
  n = jnp.tanh(gi_t[:, 2 * hdim:] + r * gh[:, 2 * hdim:])
  return (1.0 - z) * n + z * h


# ---------------------------------------------------------------------------
# Fused encoder kernel: whole source recurrence in one launch.
#   emb_ref : [S*B, E]  time-major flattened embeddings
#   outputs : enc_out [S, B, H], h_final [B, H]
# ---------------------------------------------------------------------------
def _encoder_kernel(emb_ref, wih_ref, whh_ref, bih_ref, bhh_ref,
                    enc_out_ref, h_out_ref, gi_ref):
  Sn, Bn, Hd = enc_out_ref.shape

  # All input-to-hidden gates for the whole sequence in ONE tall MXU matmul.
  gi_ref[...] = jnp.dot(emb_ref[...], wih_ref[...],
                        preferred_element_type=jnp.float32) + bih_ref[...]

  whh = whh_ref[...]
  bhh = bhh_ref[...]

  def step(t, h):
    gi_t = gi_ref[pl.ds(t * Bn, Bn), :]                     # [B, 3H]
    gh = jnp.dot(h, whh, preferred_element_type=jnp.float32) + bhh
    h_new = _gru_gates(gi_t, gh, h, Hd)
    enc_out_ref[t] = h_new
    return h_new

  h0 = jnp.zeros((Bn, Hd), jnp.float32)
  h_out_ref[...] = jax.lax.fori_loop(0, Sn, step, h0, unroll=True)


# ---------------------------------------------------------------------------
# Fused decoder kernel: whole target recurrence (GRU cell + dot attention +
# split output projection + log-softmax) in one launch.
#   emb_ref : [T*B, E] time-major flattened embeddings
#   enc_ref : [B, S, H] encoder outputs (VMEM-resident for all steps)
#   outputs : logp [T, B, V_PAD], h_final [B, H]
# ---------------------------------------------------------------------------
def _decoder_kernel(emb_ref, h0_ref, enc_ref, wih_ref, whh_ref, bih_ref,
                    bhh_ref, wouth_ref, woutc_ref, bout_ref,
                    logp_ref, h_out_ref, gi_ref):
  Tn, Bn, _ = logp_ref.shape
  Hd = whh_ref.shape[0]

  # Input-to-hidden gates for all target steps in one MXU matmul.
  gi_ref[...] = jnp.dot(emb_ref[...], wih_ref[...],
                        preferred_element_type=jnp.float32) + bih_ref[...]

  whh = whh_ref[...]
  bhh = bhh_ref[...]
  enc = enc_ref[...]                    # [B, S, H]
  w_h = wouth_ref[...]                  # [H, V_PAD]
  w_c = woutc_ref[...]                  # [H, V_PAD]
  bout = bout_ref[...]                  # [1, V_PAD]

  def step(t, h):
    gi_t = gi_ref[pl.ds(t * Bn, Bn), :]                     # [B, 3H]
    gh = jnp.dot(h, whh, preferred_element_type=jnp.float32) + bhh
    h_new = _gru_gates(gi_t, gh, h, Hd)

    # --- dot-product attention over encoder outputs (MXU, batched) ---
    hq = h_new[:, None, :]                                  # [B, 1, H]
    sc = jnp.einsum('bqh,bsh->bqs', hq, enc,
                    preferred_element_type=jnp.float32)     # [B, 1, S]
    sc = sc - jnp.max(sc, axis=-1, keepdims=True)
    e = jnp.exp(sc)
    attn = e * pl.reciprocal(jnp.sum(e, axis=-1, keepdims=True), approx=True)
    ctx = jnp.einsum('bqs,bsh->bqh', attn, enc,
                     preferred_element_type=jnp.float32)[:, 0, :]   # [B, H]

    # --- output projection (split weights, no concat) + exact log-softmax ---
    logits = (jnp.dot(h_new, w_h, preferred_element_type=jnp.float32)
              + jnp.dot(ctx, w_c, preferred_element_type=jnp.float32)
              + bout)                                       # [B, V_PAD]
    m = jnp.max(logits, axis=-1, keepdims=True)
    lse = jnp.log(jnp.sum(jnp.exp(logits - m), axis=-1, keepdims=True)) + m
    logp_ref[t] = logits - lse
    return h_new

  h_out_ref[...] = jax.lax.fori_loop(0, Tn, step, h0_ref[...], unroll=True)


# ---------------------------------------------------------------------------
# Encoder / Decoder / Translator (glue in plain JAX, hot path in the kernels)
# ---------------------------------------------------------------------------
def encode(params, source):
  """source [B, S] int32 -> (encoder_outputs [B, S, H], encoder_hidden [B, H])."""
  Bn, Sn = source.shape
  tok_tm = jnp.swapaxes(source, 0, 1).reshape(-1)             # [S*B] (tiny)
  emb = jnp.take(params["enc_emb"], tok_tm, axis=0)           # [S*B, E]

  enc_out_tm, h_final = pl.pallas_call(
      _encoder_kernel,
      out_shape=(jax.ShapeDtypeStruct((Sn, Bn, H), jnp.float32),
                 jax.ShapeDtypeStruct((Bn, H), jnp.float32)),
      in_specs=[_VMEM] * 5,
      out_specs=(_VMEM, _VMEM),
      scratch_shapes=[pltpu.VMEM((Sn * Bn, 3 * H), jnp.float32)],
  )(emb, params["enc_wih"], params["enc_whh"],
    params["enc_bih"], params["enc_bhh"])

  return jnp.swapaxes(enc_out_tm, 0, 1), h_final              # [B,S,H], [B,H]


def decode(params, encoder_outputs, encoder_hidden, decoder_input):
  """Teacher-forced decode: decoder_input [B, T] int32 -> log-probs [B, T, V]."""
  Bn, Tn = decoder_input.shape
  tok_tm = jnp.swapaxes(decoder_input, 0, 1).reshape(-1)      # [T*B] (tiny)
  emb = jnp.take(params["dec_emb"], tok_tm, axis=0)           # [T*B, E]

  logp_tm, h_final = pl.pallas_call(
      _decoder_kernel,
      out_shape=(jax.ShapeDtypeStruct((Tn, Bn, V_PAD), jnp.float32),
                 jax.ShapeDtypeStruct((Bn, H), jnp.float32)),
      in_specs=[_VMEM] * 10,
      out_specs=(_VMEM, _VMEM),
      scratch_shapes=[pltpu.VMEM((Tn * Bn, 3 * H), jnp.float32)],
  )(emb, encoder_hidden, encoder_outputs,
    params["dec_wih"], params["dec_whh"], params["dec_bih"], params["dec_bhh"],
    params["dec_wout_h"], params["dec_wout_c"], params["dec_bout"])

  outputs = jnp.swapaxes(logp_tm, 0, 1)[:, :, :V_EN]          # [B, T, V]
  return outputs, h_final, None


def translator_forward(params, source, target=None):
  encoder_outputs, encoder_hidden = encode(params, source)
  if target is not None:
    outputs, _, _ = decode(params, encoder_outputs, encoder_hidden, target)
  else:
    # TODO(synk): the reference decoder's generation length on the BOS-only
    # path is decoder-internal; here we mirror the wrapper exactly and run a
    # single BOS step through the same decoder.
    bos = jnp.full((source.shape[0], 1), BOS_ID, dtype=jnp.int32)
    outputs, _, _ = decode(params, encoder_outputs, encoder_hidden, bos)
  return outputs


# ---------------------------------------------------------------------------
# Deterministic parameter initialization
# ---------------------------------------------------------------------------
def init_params(key):
  ks = jax.random.split(key, 10)
  s = 0.1
  wout = s * jax.random.normal(ks[8], (2 * H, V_EN), jnp.float32)
  bout = s * jax.random.normal(ks[9], (1, V_EN), jnp.float32)
  pad = V_PAD - V_EN
  # Split + lane-pad the output projection: padded columns have zero weight
  # and a -1e30 bias so they carry exactly zero probability mass.
  wout_h = jnp.pad(wout[:H], ((0, 0), (0, pad)))
  wout_c = jnp.pad(wout[H:], ((0, 0), (0, pad)))
  bout_p = jnp.concatenate(
      [bout, jnp.full((1, pad), _NEG, jnp.float32)], axis=-1)
  return {
      # encoder
      "enc_emb": s * jax.random.normal(ks[0], (V_DE, E), jnp.float32),
      "enc_wih": s * jax.random.normal(ks[1], (E, 3 * H), jnp.float32),
      "enc_whh": s * jax.random.normal(ks[2], (H, 3 * H), jnp.float32),
      "enc_bih": s * jax.random.normal(ks[3], (1, 3 * H), jnp.float32),
      "enc_bhh": s * jax.random.normal(ks[4], (1, 3 * H), jnp.float32),
      # decoder
      "dec_emb": s * jax.random.normal(ks[5], (V_EN, E), jnp.float32),
      "dec_wih": s * jax.random.normal(ks[6], (E, 3 * H), jnp.float32),
      "dec_whh": s * jax.random.normal(ks[7], (H, 3 * H), jnp.float32),
      "dec_bih": jnp.zeros((1, 3 * H), jnp.float32),
      "dec_bhh": jnp.zeros((1, 3 * H), jnp.float32),
      "dec_wout_h": wout_h,     # [H, V_PAD]
      "dec_wout_c": wout_c,     # [H, V_PAD]
      "dec_bout": bout_p,       # [1, V_PAD]
  }


if __name__ == "__main__":
  key = jax.random.PRNGKey(0)
  pkey, skey, tkey = jax.random.split(key, 3)
  params = init_params(pkey)

  source = jax.random.randint(skey, (B, S), 0, V_DE, dtype=jnp.int32)
  target = jax.random.randint(tkey, (B, T), 0, V_EN, dtype=jnp.int32)

  fwd = jax.jit(functools.partial(translator_forward, params))

  # teacher-forced path (target provided)
  out_tf = jax.block_until_ready(fwd(source, target))
  assert out_tf.shape == (B, T, V_EN), out_tf.shape

  # inference-start path (target=None -> single BOS step)
  out_bos = jax.block_until_ready(translator_forward(params, source, None))
  assert out_bos.shape == (B, 1, V_EN), out_bos.shape

  # log-softmax sanity: rows sum to 1 in prob space (exact log-softmax path)
  assert jnp.allclose(jnp.exp(out_tf).sum(-1), 1.0, atol=1e-4)
  assert jnp.allclose(jnp.exp(out_bos).sum(-1), 1.0, atol=1e-4)
  assert bool(jnp.all(jnp.isfinite(out_tf)))

  print("KERNEL_OK")
</pallas_src>

<mosaic_0001>
module attributes {stable_mosaic.version = 11 : i64} {
  func.func @_encoder_kernel(%arg0: memref<16x16xf32, #tpu.memory_space<vmem>>, %arg1: memref<16x96xf32, #tpu.memory_space<vmem>>, %arg2: memref<32x96xf32, #tpu.memory_space<vmem>>, %arg3: memref<1x96xf32, #tpu.memory_space<vmem>>, %arg4: memref<1x96xf32, #tpu.memory_space<vmem>>, %arg5: memref<8x2x32xf32, #tpu.memory_space<vmem>>, %arg6: memref<2x32xf32, #tpu.memory_space<vmem>>, %arg7: memref<16x96xf32, #tpu.memory_space<vmem>>) attributes {dimension_semantics = [], scalar_prefetch = 0 : i64, scratch_operands = 1 : i64, tpu.core_type = #tpu.core_type<tc>} {
    %c0 = arith.constant 0 : index
    %c0_0 = arith.constant 0 : index
    %0 = vector.load %arg0[%c0, %c0_0] : memref<16x16xf32, #tpu.memory_space<vmem>>, vector<16x16xf32>
    %c0_1 = arith.constant 0 : index
    %c0_2 = arith.constant 0 : index
    %1 = vector.load %arg1[%c0_1, %c0_2] : memref<16x96xf32, #tpu.memory_space<vmem>>, vector<16x96xf32>
    %cst = arith.constant dense<0.000000e+00> : vector<16x96xf32>
    %2 = tpu.matmul %0, %1, %cst {dimension_numbers = #tpu.dot_dimension_numbers<[1], [0], [0], [1], [0, 0, 1, 1], [], []>} : vector<16x16xf32>, vector<16x96xf32>, vector<16x96xf32> -> vector<16x96xf32>
    %c0_3 = arith.constant 0 : index
    %c0_4 = arith.constant 0 : index
    %3 = vector.load %arg3[%c0_3, %c0_4] : memref<1x96xf32, #tpu.memory_space<vmem>>, vector<1x96xf32>
    %4 = vector.broadcast %3 : vector<1x96xf32> to vector<16x96xf32>
    %5 = arith.addf %2, %4 : vector<16x96xf32>
    %c0_5 = arith.constant 0 : index
    %c0_6 = arith.constant 0 : index
    %6 = vector.load %arg7[%c0_5, %c0_6] : memref<16x96xf32, #tpu.memory_space<vmem>>, vector<16x96xf32>
    tpu.vector_store %arg7[%c0_5, %c0_6], %5 {strides = array<i32>} : memref<16x96xf32, #tpu.memory_space<vmem>>, vector<16x96xf32>,
    %c0_7 = arith.constant 0 : index
    %c0_8 = arith.constant 0 : index
    %7 = vector.load %arg2[%c0_7, %c0_8] : memref<32x96xf32, #tpu.memory_space<vmem>>, vector<32x96xf32>
    %c0_9 = arith.constant 0 : index
    %c0_10 = arith.constant 0 : index
    %8 = vector.load %arg4[%c0_9, %c0_10] : memref<1x96xf32, #tpu.memory_space<vmem>>, vector<1x96xf32>
    %cst_11 = arith.constant 0.000000e+00 : f32
    %9 = vector.broadcast %cst_11 : f32 to vector<2x32xf32>
    %c0_i32 = arith.constant 0 : i32
    %c2_i32 = arith.constant 2 : i32
    %10 = arith.muli %c0_i32, %c2_i32 : i32
    %11 = arith.index_cast %10 : i32 to index
    %c0_12 = arith.constant 0 : index
    %12 = vector.load %arg7[%11, %c0_12] : memref<16x96xf32, #tpu.memory_space<vmem>>, vector<2x96xf32>
    %cst_13 = arith.constant dense<0.000000e+00> : vector<2x96xf32>
    %13 = tpu.matmul %9, %7, %cst_13 {dimension_numbers = #tpu.dot_dimension_numbers<[1], [0], [0], [1], [0, 0, 1, 1], [], []>} : vector<2x32xf32>, vector<32x96xf32>, vector<2x96xf32> -> vector<2x96xf32>
    %14 = vector.broadcast %8 : vector<1x96xf32> to vector<2x96xf32>
    %15 = arith.addf %13, %14 : vector<2x96xf32>
    %16 = vector.extract_strided_slice %12 {offsets = [0, 0], sizes = [2, 32], strides = [1, 1]} : vector<2x96xf32> to vector<2x32xf32>
    %17 = vector.extract_strided_slice %15 {offsets = [0, 0], sizes = [2, 32], strides = [1, 1]} : vector<2x96xf32> to vector<2x32xf32>
    %18 = arith.addf %16, %17 : vector<2x32xf32>
    %19 = arith.negf %18 : vector<2x32xf32>
    %20 = math.exp %19 : vector<2x32xf32>
    %cst_14 = arith.constant 1.000000e+00 : f32
    %21 = vector.broadcast %cst_14 : f32 to vector<2x32xf32>
    %22 = arith.addf %21, %20 : vector<2x32xf32>
    %23 = arith.divf %21, %22 : vector<2x32xf32>
    %24 = vector.extract_strided_slice %12 {offsets = [0, 32], sizes = [2, 32], strides = [1, 1]} : vector<2x96xf32> to vector<2x32xf32>
    %25 = vector.extract_strided_slice %15 {offsets = [0, 32], sizes = [2, 32], strides = [1, 1]} : vector<2x96xf32> to vector<2x32xf32>
    %26 = arith.addf %24, %25 : vector<2x32xf32>
    %27 = arith.negf %26 : vector<2x32xf32>
    %28 = math.exp %27 : vector<2x32xf32>
    %cst_15 = arith.constant 1.000000e+00 : f32
    %29 = vector.broadcast %cst_15 : f32 to vector<2x32xf32>
    %30 = arith.addf %29, %28 : vector<2x32xf32>
    %31 = arith.divf %29, %30 : vector<2x32xf32>
    %32 = vector.extract_strided_slice %12 {offsets = [0, 64], sizes = [2, 32], strides = [1, 1]} : vector<2x96xf32> to vector<2x32xf32>
    %33 = vector.extract_strided_slice %15 {offsets = [0, 64], sizes = [2, 32], strides = [1, 1]} : vector<2x96xf32> to vector<2x32xf32>
    %34 = arith.mulf %23, %33 : vector<2x32xf32>
    %35 = arith.addf %32, %34 : vector<2x32xf32>
    %36 = math.tanh %35 : vector<2x32xf32>
    %cst_16 = arith.constant 1.000000e+00 : f32
    %37 = vector.broadcast %cst_16 : f32 to vector<2x32xf32>
    %38 = arith.subf %37, %31 : vector<2x32xf32>
    %39 = arith.mulf %38, %36 : vector<2x32xf32>
    %40 = arith.mulf %31, %9 : vector<2x32xf32>
    %41 = arith.addf %39, %40 : vector<2x32xf32>
    %42 = arith.index_cast %c0_i32 : i32 to index
    %c0_17 = arith.constant 0 : index
    %c0_18 = arith.constant 0 : index
    %43 = vector.load %arg5[%42, %c0_17, %c0_18] : memref<8x2x32xf32, #tpu.memory_space<vmem>>, vector<1x2x32xf32>
    %44 = vector.shape_cast %43 : vector<1x2x32xf32> to vector<2x32xf32>
    %45 = vector.shape_cast %41 : vector<2x32xf32> to vector<1x2x32xf32>
    tpu.vector_store %arg5[%42, %c0_17, %c0_18], %45 {strides = array<i32>} : memref<8x2x32xf32, #tpu.memory_space<vmem>>, vector<1x2x32xf32>,
    %c1_i32 = arith.constant 1 : i32
    %c2_i32_19 = arith.constant 2 : i32
    %46 = arith.muli %c1_i32, %c2_i32_19 : i32
    %47 = arith.index_cast %46 : i32 to index
    %c0_20 = arith.constant 0 : index
    %48 = vector.load %arg7[%47, %c0_20] : memref<16x96xf32, #tpu.memory_space<vmem>>, vector<2x96xf32>
    %cst_21 = arith.constant dense<0.000000e+00> : vector<2x96xf32>
    %49 = tpu.matmul %41, %7, %cst_21 {dimension_numbers = #tpu.dot_dimension_numbers<[1], [0], [0], [1], [0, 0, 1, 1], [], []>} : vector<2x32xf32>, vector<32x96xf32>, vector<2x96xf32> -> vector<2x96xf32>
    %50 = vector.broadcast %8 : vector<1x96xf32> to vector<2x96xf32>
    %51 = arith.addf %49, %50 : vector<2x96xf32>
    %52 = vector.extract_strided_slice %48 {offsets = [0, 0], sizes = [2, 32], strides = [1, 1]} : vector<2x96xf32> to vector<2x32xf32>
    %53 = vector.extract_strided_slice %51 {offsets = [0, 0], sizes = [2, 32], strides = [1, 1]} : vector<2x96xf32> to vector<2x32xf32>
    %54 = arith.addf %52, %53 : vector<2x32xf32>
    %55 = arith.negf %54 : vector<2x32xf32>
    %56 = math.exp %55 : vector<2x32xf32>
    %cst_22 = arith.constant 1.000000e+00 : f32
    %57 = vector.broadcast %cst_22 : f32 to vector<2x32xf32>
    %58 = arith.addf %57, %56 : vector<2x32xf32>
    %59 = arith.divf %57, %58 : vector<2x32xf32>
    %60 = vector.extract_strided_slice %48 {offsets = [0, 32], sizes = [2, 32], strides = [1, 1]} : vector<2x96xf32> to vector<2x32xf32>
    %61 = vector.extract_strided_slice %51 {offsets = [0, 32], sizes = [2, 32], strides = [1, 1]} : vector<2x96xf32> to vector<2x32xf32>
    %62 = arith.addf %60, %61 : vector<2x32xf32>
    %63 = arith.negf %62 : vector<2x32xf32>
    %64 = math.exp %63 : vector<2x32xf32>
    %cst_23 = arith.constant 1.000000e+00 : f32
    %65 = vector.broadcast %cst_23 : f32 to vector<2x32xf32>
    %66 = arith.addf %65, %64 : vector<2x32xf32>
    %67 = arith.divf %65, %66 : vector<2x32xf32>
    %68 = vector.extract_strided_slice %48 {offsets = [0, 64], sizes = [2, 32], strides = [1, 1]} : vector<2x96xf32> to vector<2x32xf32>
    %69 = vector.extract_strided_slice %51 {offsets = [0, 64], sizes = [2, 32], strides = [1, 1]} : vector<2x96xf32> to vector<2x32xf32>
    %70 = arith.mulf %59, %69 : vector<2x32xf32>
    %71 = arith.addf %68, %70 : vector<2x32xf32>
    %72 = math.tanh %71 : vector<2x32xf32>
    %cst_24 = arith.constant 1.000000e+00 : f32
    %73 = vector.broadcast %cst_24 : f32 to vector<2x32xf32>
    %74 = arith.subf %73, %67 : vector<2x32xf32>
    %75 = arith.mulf %74, %72 : vector<2x32xf32>
    %76 = arith.mulf %67, %41 : vector<2x32xf32>
    %77 = arith.addf %75, %76 : vector<2x32xf32>
    %78 = arith.index_cast %c1_i32 : i32 to index
    %c0_25 = arith.constant 0 : index
    %c0_26 = arith.constant 0 : index
    %79 = vector.load %arg5[%78, %c0_25, %c0_26] : memref<8x2x32xf32, #tpu.memory_space<vmem>>, vector<1x2x32xf32>
    %80 = vector.shape_cast %79 : vector<1x2x32xf32> to vector<2x32xf32>
    %81 = vector.shape_cast %77 : vector<2x32xf32> to vector<1x2x32xf32>
    tpu.vector_store %arg5[%78, %c0_25, %c0_26], %81 {strides = array<i32>} : memref<8x2x32xf32, #tpu.memory_space<vmem>>, vector<1x2x32xf32>,
    %c2_i32_27 = arith.constant 2 : i32
    %c2_i32_28 = arith.constant 2 : i32
    %82 = arith.muli %c2_i32_27, %c2_i32_28 : i32
    %83 = arith.index_cast %82 : i32 to index
    %c0_29 = arith.constant 0 : index
    %84 = vector.load %arg7[%83, %c0_29] : memref<16x96xf32, #tpu.memory_space<vmem>>, vector<2x96xf32>
    %cst_30 = arith.constant dense<0.000000e+00> : vector<2x96xf32>
    %85 = tpu.matmul %77, %7, %cst_30 {dimension_numbers = #tpu.dot_dimension_numbers<[1], [0], [0], [1], [0, 0, 1, 1], [], []>} : vector<2x32xf32>, vector<32x96xf32>, vector<2x96xf32> -> vector<2x96xf32>
    %86 = vector.broadcast %8 : vector<1x96xf32> to vector<2x96xf32>
    %87 = arith.addf %85, %86 : vector<2x96xf32>
    %88 = vector.extract_strided_slice %84 {offsets = [0, 0], sizes = [2, 32], strides = [1, 1]} : vector<2x96xf32> to vector<2x32xf32>
    %89 = vector.extract_strided_slice %87 {offsets = [0, 0], sizes = [2, 32], strides = [1, 1]} : vector<2x96xf32> to vector<2x32xf32>
    %90 = arith.addf %88, %89 : vector<2x32xf32>
    %91 = arith.negf %90 : vector<2x32xf32>
    %92 = math.exp %91 : vector<2x32xf32>
    %cst_31 = arith.constant 1.000000e+00 : f32
    %93 = vector.broadcast %cst_31 : f32 to vector<2x32xf32>
    %94 = arith.addf %93, %92 : vector<2x32xf32>
    %95 = arith.divf %93, %94 : vector<2x32xf32>
    %96 = vector.extract_strided_slice %84 {offsets = [0, 32], sizes = [2, 32], strides = [1, 1]} : vector<2x96xf32> to vector<2x32xf32>
    %97 = vector.extract_strided_slice %87 {offsets = [0, 32], sizes = [2, 32], strides = [1, 1]} : vector<2x96xf32> to vector<2x32xf32>
    %98 = arith.addf %96, %97 : vector<2x32xf32>
    %99 = arith.negf %98 : vector<2x32xf32>
    %100 = math.exp %99 : vector<2x32xf32>
    %cst_32 = arith.constant 1.000000e+00 : f32
    %101 = vector.broadcast %cst_32 : f32 to vector<2x32xf32>
    %102 = arith.addf %101, %100 : vector<2x32xf32>
    %103 = arith.divf %101, %102 : vector<2x32xf32>
    %104 = vector.extract_strided_slice %84 {offsets = [0, 64], sizes = [2, 32], strides = [1, 1]} : vector<2x96xf32> to vector<2x32xf32>
    %105 = vector.extract_strided_slice %87 {offsets = [0, 64], sizes = [2, 32], strides = [1, 1]} : vector<2x96xf32> to vector<2x32xf32>
    %106 = arith.mulf %95, %105 : vector<2x32xf32>
    %107 = arith.addf %104, %106 : vector<2x32xf32>
    %108 = math.tanh %107 : vector<2x32xf32>
    %cst_33 = arith.constant 1.000000e+00 : f32
    %109 = vector.broadcast %cst_33 : f32 to vector<2x32xf32>
    %110 = arith.subf %109, %103 : vector<2x32xf32>
    %111 = arith.mulf %110, %108 : vector<2x32xf32>
    %112 = arith.mulf %103, %77 : vector<2x32xf32>
    %113 = arith.addf %111, %112 : vector<2x32xf32>
    %114 = arith.index_cast %c2_i32_27 : i32 to index
    %c0_34 = arith.constant 0 : index
    %c0_35 = arith.constant 0 : index
    %115 = vector.load %arg5[%114, %c0_34, %c0_35] : memref<8x2x32xf32, #tpu.memory_space<vmem>>, vector<1x2x32xf32>
    %116 = vector.shape_cast %115 : vector<1x2x32xf32> to vector<2x32xf32>
    %117 = vector.shape_cast %113 : vector<2x32xf32> to vector<1x2x32xf32>
    tpu.vector_store %arg5[%114, %c0_34, %c0_35], %117 {strides = array<i32>} : memref<8x2x32xf32, #tpu.memory_space<vmem>>, vector<1x2x32xf32>,
    %c3_i32 = arith.constant 3 : i32
    %c2_i32_36 = arith.constant 2 : i32
    %118 = arith.muli %c3_i32, %c2_i32_36 : i32
    %119 = arith.index_cast %118 : i32 to index
    %c0_37 = arith.constant 0 : index
    %120 = vector.load %arg7[%119, %c0_37] : memref<16x96xf32, #tpu.memory_space<vmem>>, vector<2x96xf32>
    %cst_38 = arith.constant dense<0.000000e+00> : vector<2x96xf32>
    %121 = tpu.matmul %113, %7, %cst_38 {dimension_numbers = #tpu.dot_dimension_numbers<[1], [0], [0], [1], [0, 0, 1, 1], [], []>} : vector<2x32xf32>, vector<32x96xf32>, vector<2x96xf32> -> vector<2x96xf32>
    %122 = vector.broadcast %8 : vector<1x96xf32> to vector<2x96xf32>
    %123 = arith.addf %121, %122 : vector<2x96xf32>
    %124 = vector.extract_strided_slice %120 {offsets = [0, 0], sizes = [2, 32], strides = [1, 1]} : vector<2x96xf32> to vector<2x32xf32>
    %125 = vector.extract_strided_slice %123 {offsets = [0, 0], sizes = [2, 32], strides = [1, 1]} : vector<2x96xf32> to vector<2x32xf32>
    %126 = arith.addf %124, %125 : vector<2x32xf32>
    %127 = arith.negf %126 : vector<2x32xf32>
    %128 = math.exp %127 : vector<2x32xf32>
    %cst_39 = arith.constant 1.000000e+00 : f32
    %129 = vector.broadcast %cst_39 : f32 to vector<2x32xf32>
    %130 = arith.addf %129, %128 : vector<2x32xf32>
    %131 = arith.divf %129, %130 : vector<2x32xf32>
    %132 = vector.extract_strided_slice %120 {offsets = [0, 32], sizes = [2, 32], strides = [1, 1]} : vector<2x96xf32> to vector<2x32xf32>
    %133 = vector.extract_strided_slice %123 {offsets = [0, 32], sizes = [2, 32], strides = [1, 1]} : vector<2x96xf32> to vector<2x32xf32>
    %134 = arith.addf %132, %133 : vector<2x32xf32>
    %135 = arith.negf %134 : vector<2x32xf32>
    %136 = math.exp %135 : vector<2x32xf32>
    %cst_40 = arith.constant 1.000000e+00 : f32
    %137 = vector.broadcast %cst_40 : f32 to vector<2x32xf32>
    %138 = arith.addf %137, %136 : vector<2x32xf32>
    %139 = arith.divf %137, %138 : vector<2x32xf32>
    %140 = vector.extract_strided_slice %120 {offsets = [0, 64], sizes = [2, 32], strides = [1, 1]} : vector<2x96xf32> to vector<2x32xf32>
    %141 = vector.extract_strided_slice %123 {offsets = [0, 64], sizes = [2, 32], strides = [1, 1]} : vector<2x96xf32> to vector<2x32xf32>
    %142 = arith.mulf %131, %141 : vector<2x32xf32>
    %143 = arith.addf %140, %142 : vector<2x32xf32>
    %144 = math.tanh %143 : vector<2x32xf32>
    %cst_41 = arith.constant 1.000000e+00 : f32
    %145 = vector.broadcast %cst_41 : f32 to vector<2x32xf32>
    %146 = arith.subf %145, %139 : vector<2x32xf32>
    %147 = arith.mulf %146, %144 : vector<2x32xf32>
    %148 = arith.mulf %139, %113 : vector<2x32xf32>
    %149 = arith.addf %147, %148 : vector<2x32xf32>
    %150 = arith.index_cast %c3_i32 : i32 to index
    %c0_42 = arith.constant 0 : index
    %c0_43 = arith.constant 0 : index
    %151 = vector.load %arg5[%150, %c0_42, %c0_43] : memref<8x2x32xf32, #tpu.memory_space<vmem>>, vector<1x2x32xf32>
    %152 = vector.shape_cast %151 : vector<1x2x32xf32> to vector<2x32xf32>
    %153 = vector.shape_cast %149 : vector<2x32xf32> to vector<1x2x32xf32>
    tpu.vector_store %arg5[%150, %c0_42, %c0_43], %153 {strides = array<i32>} : memref<8x2x32xf32, #tpu.memory_space<vmem>>, vector<1x2x32xf32>,
    %c4_i32 = arith.constant 4 : i32
    %c2_i32_44 = arith.constant 2 : i32
    %154 = arith.muli %c4_i32, %c2_i32_44 : i32
    %155 = arith.index_cast %154 : i32 to index
    %c0_45 = arith.constant 0 : index
    %156 = vector.load %arg7[%155, %c0_45] : memref<16x96xf32, #tpu.memory_space<vmem>>, vector<2x96xf32>
    %cst_46 = arith.constant dense<0.000000e+00> : vector<2x96xf32>
    %157 = tpu.matmul %149, %7, %cst_46 {dimension_numbers = #tpu.dot_dimension_numbers<[1], [0], [0], [1], [0, 0, 1, 1], [], []>} : vector<2x32xf32>, vector<32x96xf32>, vector<2x96xf32> -> vector<2x96xf32>
    %158 = vector.broadcast %8 : vector<1x96xf32> to vector<2x96xf32>
    %159 = arith.addf %157, %158 : vector<2x96xf32>
    %160 = vector.extract_strided_slice %156 {offsets = [0, 0], sizes = [2, 32], strides = [1, 1]} : vector<2x96xf32> to vector<2x32xf32>
    %161 = vector.extract_strided_slice %159 {offsets = [0, 0], sizes = [2, 32], strides = [1, 1]} : vector<2x96xf32> to vector<2x32xf32>
    %162 = arith.addf %160, %161 : vector<2x32xf32>
    %163 = arith.negf %162 : vector<2x32xf32>
    %164 = math.exp %163 : vector<2x32xf32>
    %cst_47 = arith.constant 1.000000e+00 : f32
    %165 = vector.broadcast %cst_47 : f32 to vector<2x32xf32>
    %166 = arith.addf %165, %164 : vector<2x32xf32>
    %167 = arith.divf %165, %166 : vector<2x32xf32>
    %168 = vector.extract_strided_slice %156 {offsets = [0, 32], sizes = [2, 32], strides = [1, 1]} : vector<2x96xf32> to vector<2x32xf32>
    %169 = vector.extract_strided_slice %159 {offsets = [0, 32], sizes = [2, 32], strides = [1, 1]} : vector<2x96xf32> to vector<2x32xf32>
    %170 = arith.addf %168, %169 : vector<2x32xf32>
    %171 = arith.negf %170 : vector<2x32xf32>
    %172 = math.exp %171 : vector<2x32xf32>
    %cst_48 = arith.constant 1.000000e+00 : f32
    %173 = vector.broadcast %cst_48 : f32 to vector<2x32xf32>
    %174 = arith.addf %173, %172 : vector<2x32xf32>
    %175 = arith.divf %173, %174 : vector<2x32xf32>
    %176 = vector.extract_strided_slice %156 {offsets = [0, 64], sizes = [2, 32], strides = [1, 1]} : vector<2x96xf32> to vector<2x32xf32>
    %177 = vector.extract_strided_slice %159 {offsets = [0, 64], sizes = [2, 32], strides = [1, 1]} : vector<2x96xf32> to vector<2x32xf32>
    %178 = arith.mulf %167, %177 : vector<2x32xf32>
    %179 = arith.addf %176, %178 : vector<2x32xf32>
    %180 = math.tanh %179 : vector<2x32xf32>
    %cst_49 = arith.constant 1.000000e+00 : f32
    %181 = vector.broadcast %cst_49 : f32 to vector<2x32xf32>
    %182 = arith.subf %181, %175 : vector<2x32xf32>
    %183 = arith.mulf %182, %180 : vector<2x32xf32>
    %184 = arith.mulf %175, %149 : vector<2x32xf32>
    %185 = arith.addf %183, %184 : vector<2x32xf32>
    %186 = arith.index_cast %c4_i32 : i32 to index
    %c0_50 = arith.constant 0 : index
    %c0_51 = arith.constant 0 : index
    %187 = vector.load %arg5[%186, %c0_50, %c0_51] : memref<8x2x32xf32, #tpu.memory_space<vmem>>, vector<1x2x32xf32>
    %188 = vector.shape_cast %187 : vector<1x2x32xf32> to vector<2x32xf32>
    %189 = vector.shape_cast %185 : vector<2x32xf32> to vector<1x2x32xf32>
    tpu.vector_store %arg5[%186, %c0_50, %c0_51], %189 {strides = array<i32>} : memref<8x2x32xf32, #tpu.memory_space<vmem>>, vector<1x2x32xf32>,
    %c5_i32 = arith.constant 5 : i32
    %c2_i32_52 = arith.constant 2 : i32
    %190 = arith.muli %c5_i32, %c2_i32_52 : i32
    %191 = arith.index_cast %190 : i32 to index
    %c0_53 = arith.constant 0 : index
    %192 = vector.load %arg7[%191, %c0_53] : memref<16x96xf32, #tpu.memory_space<vmem>>, vector<2x96xf32>
    %cst_54 = arith.constant dense<0.000000e+00> : vector<2x96xf32>
    %193 = tpu.matmul %185, %7, %cst_54 {dimension_numbers = #tpu.dot_dimension_numbers<[1], [0], [0], [1], [0, 0, 1, 1], [], []>} : vector<2x32xf32>, vector<32x96xf32>, vector<2x96xf32> -> vector<2x96xf32>
    %194 = vector.broadcast %8 : vector<1x96xf32> to vector<2x96xf32>
    %195 = arith.addf %193, %194 : vector<2x96xf32>
    %196 = vector.extract_strided_slice %192 {offsets = [0, 0], sizes = [2, 32], strides = [1, 1]} : vector<2x96xf32> to vector<2x32xf32>
    %197 = vector.extract_strided_slice %195 {offsets = [0, 0], sizes = [2, 32], strides = [1, 1]} : vector<2x96xf32> to vector<2x32xf32>
    %198 = arith.addf %196, %197 : vector<2x32xf32>
    %199 = arith.negf %198 : vector<2x32xf32>
    %200 = math.exp %199 : vector<2x32xf32>
    %cst_55 = arith.constant 1.000000e+00 : f32
    %201 = vector.broadcast %cst_55 : f32 to vector<2x32xf32>
    %202 = arith.addf %201, %200 : vector<2x32xf32>
    %203 = arith.divf %201, %202 : vector<2x32xf32>
    %204 = vector.extract_strided_slice %192 {offsets = [0, 32], sizes = [2, 32], strides = [1, 1]} : vector<2x96xf32> to vector<2x32xf32>
    %205 = vector.extract_strided_slice %195 {offsets = [0, 32], sizes = [2, 32], strides = [1, 1]} : vector<2x96xf32> to vector<2x32xf32>
    %206 = arith.addf %204, %205 : vector<2x32xf32>
    %207 = arith.negf %206 : vector<2x32xf32>
    %208 = math.exp %207 : vector<2x32xf32>
    %cst_56 = arith.constant 1.000000e+00 : f32
    %209 = vector.broadcast %cst_56 : f32 to vector<2x32xf32>
    %210 = arith.addf %209, %208 : vector<2x32xf32>
    %211 = arith.divf %209, %210 : vector<2x32xf32>
    %212 = vector.extract_strided_slice %192 {offsets = [0, 64], sizes = [2, 32], strides = [1, 1]} : vector<2x96xf32> to vector<2x32xf32>
    %213 = vector.extract_strided_slice %195 {offsets = [0, 64], sizes = [2, 32], strides = [1, 1]} : vector<2x96xf32> to vector<2x32xf32>
    %214 = arith.mulf %203, %213 : vector<2x32xf32>
    %215 = arith.addf %212, %214 : vector<2x32xf32>
    %216 = math.tanh %215 : vector<2x32xf32>
    %cst_57 = arith.constant 1.000000e+00 : f32
    %217 = vector.broadcast %cst_57 : f32 to vector<2x32xf32>
    %218 = arith.subf %217, %211 : vector<2x32xf32>
    %219 = arith.mulf %218, %216 : vector<2x32xf32>
    %220 = arith.mulf %211, %185 : vector<2x32xf32>
    %221 = arith.addf %219, %220 : vector<2x32xf32>
    %222 = arith.index_cast %c5_i32 : i32 to index
    %c0_58 = arith.constant 0 : index
    %c0_59 = arith.constant 0 : index
    %223 = vector.load %arg5[%222, %c0_58, %c0_59] : memref<8x2x32xf32, #tpu.memory_space<vmem>>, vector<1x2x32xf32>
    %224 = vector.shape_cast %223 : vector<1x2x32xf32> to vector<2x32xf32>
    %225 = vector.shape_cast %221 : vector<2x32xf32> to vector<1x2x32xf32>
    tpu.vector_store %arg5[%222, %c0_58, %c0_59], %225 {strides = array<i32>} : memref<8x2x32xf32, #tpu.memory_space<vmem>>, vector<1x2x32xf32>,
    %c6_i32 = arith.constant 6 : i32
    %c2_i32_60 = arith.constant 2 : i32
    %226 = arith.muli %c6_i32, %c2_i32_60 : i32
    %227 = arith.index_cast %226 : i32 to index
    %c0_61 = arith.constant 0 : index
    %228 = vector.load %arg7[%227, %c0_61] : memref<16x96xf32, #tpu.memory_space<vmem>>, vector<2x96xf32>
    %cst_62 = arith.constant dense<0.000000e+00> : vector<2x96xf32>
    %229 = tpu.matmul %221, %7, %cst_62 {dimension_numbers = #tpu.dot_dimension_numbers<[1], [0], [0], [1], [0, 0, 1, 1], [], []>} : vector<2x32xf32>, vector<32x96xf32>, vector<2x96xf32> -> vector<2x96xf32>
    %230 = vector.broadcast %8 : vector<1x96xf32> to vector<2x96xf32>
    %231 = arith.addf %229, %230 : vector<2x96xf32>
    %232 = vector.extract_strided_slice %228 {offsets = [0, 0], sizes = [2, 32], strides = [1, 1]} : vector<2x96xf32> to vector<2x32xf32>
    %233 = vector.extract_strided_slice %231 {offsets = [0, 0], sizes = [2, 32], strides = [1, 1]} : vector<2x96xf32> to vector<2x32xf32>
    %234 = arith.addf %232, %233 : vector<2x32xf32>
    %235 = arith.negf %234 : vector<2x32xf32>
    %236 = math.exp %235 : vector<2x32xf32>
    %cst_63 = arith.constant 1.000000e+00 : f32
    %237 = vector.broadcast %cst_63 : f32 to vector<2x32xf32>
    %238 = arith.addf %237, %236 : vector<2x32xf32>
    %239 = arith.divf %237, %238 : vector<2x32xf32>
    %240 = vector.extract_strided_slice %228 {offsets = [0, 32], sizes = [2, 32], strides = [1, 1]} : vector<2x96xf32> to vector<2x32xf32>
    %241 = vector.extract_strided_slice %231 {offsets = [0, 32], sizes = [2, 32], strides = [1, 1]} : vector<2x96xf32> to vector<2x32xf32>
    %242 = arith.addf %240, %241 : vector<2x32xf32>
    %243 = arith.negf %242 : vector<2x32xf32>
    %244 = math.exp %243 : vector<2x32xf32>
    %cst_64 = arith.constant 1.000000e+00 : f32
    %245 = vector.broadcast %cst_64 : f32 to vector<2x32xf32>
    %246 = arith.addf %245, %244 : vector<2x32xf32>
    %247 = arith.divf %245, %246 : vector<2x32xf32>
    %248 = vector.extract_strided_slice %228 {offsets = [0, 64], sizes = [2, 32], strides = [1, 1]} : vector<2x96xf32> to vector<2x32xf32>
    %249 = vector.extract_strided_slice %231 {offsets = [0, 64], sizes = [2, 32], strides = [1, 1]} : vector<2x96xf32> to vector<2x32xf32>
    %250 = arith.mulf %239, %249 : vector<2x32xf32>
    %251 = arith.addf %248, %250 : vector<2x32xf32>
    %252 = math.tanh %251 : vector<2x32xf32>
    %cst_65 = arith.constant 1.000000e+00 : f32
    %253 = vector.broadcast %cst_65 : f32 to vector<2x32xf32>
    %254 = arith.subf %253, %247 : vector<2x32xf32>
    %255 = arith.mulf %254, %252 : vector<2x32xf32>
    %256 = arith.mulf %247, %221 : vector<2x32xf32>
    %257 = arith.addf %255, %256 : vector<2x32xf32>
    %258 = arith.index_cast %c6_i32 : i32 to index
    %c0_66 = arith.constant 0 : index
    %c0_67 = arith.constant 0 : index
    %259 = vector.load %arg5[%258, %c0_66, %c0_67] : memref<8x2x32xf32, #tpu.memory_space<vmem>>, vector<1x2x32xf32>
    %260 = vector.shape_cast %259 : vector<1x2x32xf32> to vector<2x32xf32>
    %261 = vector.shape_cast %257 : vector<2x32xf32> to vector<1x2x32xf32>
    tpu.vector_store %arg5[%258, %c0_66, %c0_67], %261 {strides = array<i32>} : memref<8x2x32xf32, #tpu.memory_space<vmem>>, vector<1x2x32xf32>,
    %c7_i32 = arith.constant 7 : i32
    %c2_i32_68 = arith.constant 2 : i32
    %262 = arith.muli %c7_i32, %c2_i32_68 : i32
    %263 = arith.index_cast %262 : i32 to index
    %c0_69 = arith.constant 0 : index
    %264 = vector.load %arg7[%263, %c0_69] : memref<16x96xf32, #tpu.memory_space<vmem>>, vector<2x96xf32>
    %cst_70 = arith.constant dense<0.000000e+00> : vector<2x96xf32>
    %265 = tpu.matmul %257, %7, %cst_70 {dimension_numbers = #tpu.dot_dimension_numbers<[1], [0], [0], [1], [0, 0, 1, 1], [], []>} : vector<2x32xf32>, vector<32x96xf32>, vector<2x96xf32> -> vector<2x96xf32>
    %266 = vector.broadcast %8 : vector<1x96xf32> to vector<2x96xf32>
    %267 = arith.addf %265, %266 : vector<2x96xf32>
    %268 = vector.extract_strided_slice %264 {offsets = [0, 0], sizes = [2, 32], strides = [1, 1]} : vector<2x96xf32> to vector<2x32xf32>
    %269 = vector.extract_strided_slice %267 {offsets = [0, 0], sizes = [2, 32], strides = [1, 1]} : vector<2x96xf32> to vector<2x32xf32>
    %270 = arith.addf %268, %269 : vector<2x32xf32>
    %271 = arith.negf %270 : vector<2x32xf32>
    %272 = math.exp %271 : vector<2x32xf32>
    %cst_71 = arith.constant 1.000000e+00 : f32
    %273 = vector.broadcast %cst_71 : f32 to vector<2x32xf32>
    %274 = arith.addf %273, %272 : vector<2x32xf32>
    %275 = arith.divf %273, %274 : vector<2x32xf32>
    %276 = vector.extract_strided_slice %264 {offsets = [0, 32], sizes = [2, 32], strides = [1, 1]} : vector<2x96xf32> to vector<2x32xf32>
    %277 = vector.extract_strided_slice %267 {offsets = [0, 32], sizes = [2, 32], strides = [1, 1]} : vector<2x96xf32> to vector<2x32xf32>
    %278 = arith.addf %276, %277 : vector<2x32xf32>
    %279 = arith.negf %278 : vector<2x32xf32>
    %280 = math.exp %279 : vector<2x32xf32>
    %cst_72 = arith.constant 1.000000e+00 : f32
    %281 = vector.broadcast %cst_72 : f32 to vector<2x32xf32>
    %282 = arith.addf %281, %280 : vector<2x32xf32>
    %283 = arith.divf %281, %282 : vector<2x32xf32>
    %284 = vector.extract_strided_slice %264 {offsets = [0, 64], sizes = [2, 32], strides = [1, 1]} : vector<2x96xf32> to vector<2x32xf32>
    %285 = vector.extract_strided_slice %267 {offsets = [0, 64], sizes = [2, 32], strides = [1, 1]} : vector<2x96xf32> to vector<2x32xf32>
    %286 = arith.mulf %275, %285 : vector<2x32xf32>
    %287 = arith.addf %284, %286 : vector<2x32xf32>
    %288 = math.tanh %287 : vector<2x32xf32>
    %cst_73 = arith.constant 1.000000e+00 : f32
    %289 = vector.broadcast %cst_73 : f32 to vector<2x32xf32>
    %290 = arith.subf %289, %283 : vector<2x32xf32>
    %291 = arith.mulf %290, %288 : vector<2x32xf32>
    %292 = arith.mulf %283, %257 : vector<2x32xf32>
    %293 = arith.addf %291, %292 : vector<2x32xf32>
    %294 = arith.index_cast %c7_i32 : i32 to index
    %c0_74 = arith.constant 0 : index
    %c0_75 = arith.constant 0 : index
    %295 = vector.load %arg5[%294, %c0_74, %c0_75] : memref<8x2x32xf32, #tpu.memory_space<vmem>>, vector<1x2x32xf32>
    %296 = vector.shape_cast %295 : vector<1x2x32xf32> to vector<2x32xf32>
    %297 = vector.shape_cast %293 : vector<2x32xf32> to vector<1x2x32xf32>
    tpu.vector_store %arg5[%294, %c0_74, %c0_75], %297 {strides = array<i32>} : memref<8x2x32xf32, #tpu.memory_space<vmem>>, vector<1x2x32xf32>,
    %c8_i32 = arith.constant 8 : i32
    %c0_76 = arith.constant 0 : index
    %c0_77 = arith.constant 0 : index
    %298 = vector.load %arg6[%c0_76, %c0_77] : memref<2x32xf32, #tpu.memory_space<vmem>>, vector<2x32xf32>
    tpu.vector_store %arg6[%c0_76, %c0_77], %293 {strides = array<i32>} : memref<2x32xf32, #tpu.memory_space<vmem>>, vector<2x32xf32>,
    return
  }
}

module attributes {stable_mosaic.version = 11 : i64} {
  func.func @_decoder_kernel(%arg0: memref<8x16xf32, #tpu.memory_space<vmem>>, %arg1: memref<2x32xf32, #tpu.memory_space<vmem>>, %arg2: memref<2x8x32xf32, #tpu.memory_space<vmem>>, %arg3: memref<16x96xf32, #tpu.memory_space<vmem>>, %arg4: memref<32x96xf32, #tpu.memory_space<vmem>>, %arg5: memref<1x96xf32, #tpu.memory_space<vmem>>, %arg6: memref<1x96xf32, #tpu.memory_space<vmem>>, %arg7: memref<32x128xf32, #tpu.memory_space<vmem>>, %arg8: memref<32x128xf32, #tpu.memory_space<vmem>>, %arg9: memref<1x128xf32, #tpu.memory_space<vmem>>, %arg10: memref<4x2x128xf32, #tpu.memory_space<vmem>>, %arg11: memref<2x32xf32, #tpu.memory_space<vmem>>, %arg12: memref<8x96xf32, #tpu.memory_space<vmem>>) attributes {dimension_semantics = [], scalar_prefetch = 0 : i64, scratch_operands = 1 : i64, tpu.core_type = #tpu.core_type<tc>} {
    %c0 = arith.constant 0 : index
    %c0_0 = arith.constant 0 : index
    %0 = vector.load %arg0[%c0, %c0_0] : memref<8x16xf32, #tpu.memory_space<vmem>>, vector<8x16xf32>
    %c0_1 = arith.constant 0 : index
    %c0_2 = arith.constant 0 : index
    %1 = vector.load %arg3[%c0_1, %c0_2] : memref<16x96xf32, #tpu.memory_space<vmem>>, vector<16x96xf32>
    %cst = arith.constant dense<0.000000e+00> : vector<8x96xf32>
    %2 = tpu.matmul %0, %1, %cst {dimension_numbers = #tpu.dot_dimension_numbers<[1], [0], [0], [1], [0, 0, 1, 1], [], []>} : vector<8x16xf32>, vector<16x96xf32>, vector<8x96xf32> -> vector<8x96xf32>
    %c0_3 = arith.constant 0 : index
    %c0_4 = arith.constant 0 : index
    %3 = vector.load %arg5[%c0_3, %c0_4] : memref<1x96xf32, #tpu.memory_space<vmem>>, vector<1x96xf32>
    %4 = vector.broadcast %3 : vector<1x96xf32> to vector<8x96xf32>
    %5 = arith.addf %2, %4 : vector<8x96xf32>
    %c0_5 = arith.constant 0 : index
    %c0_6 = arith.constant 0 : index
    %6 = vector.load %arg12[%c0_5, %c0_6] : memref<8x96xf32, #tpu.memory_space<vmem>>, vector<8x96xf32>
    tpu.vector_store %arg12[%c0_5, %c0_6], %5 {strides = array<i32>} : memref<8x96xf32, #tpu.memory_space<vmem>>, vector<8x96xf32>,
    %c0_7 = arith.constant 0 : index
    %c0_8 = arith.constant 0 : index
    %7 = vector.load %arg4[%c0_7, %c0_8] : memref<32x96xf32, #tpu.memory_space<vmem>>, vector<32x96xf32>
    %c0_9 = arith.constant 0 : index
    %c0_10 = arith.constant 0 : index
    %8 = vector.load %arg6[%c0_9, %c0_10] : memref<1x96xf32, #tpu.memory_space<vmem>>, vector<1x96xf32>
    %c0_11 = arith.constant 0 : index
    %c0_12 = arith.constant 0 : index
    %c0_13 = arith.constant 0 : index
    %9 = vector.load %arg2[%c0_11, %c0_12, %c0_13] : memref<2x8x32xf32, #tpu.memory_space<vmem>>, vector<2x8x32xf32>
    %c0_14 = arith.constant 0 : index
    %c0_15 = arith.constant 0 : index
    %10 = vector.load %arg7[%c0_14, %c0_15] : memref<32x128xf32, #tpu.memory_space<vmem>>, vector<32x128xf32>
    %c0_16 = arith.constant 0 : index
    %c0_17 = arith.constant 0 : index
    %11 = vector.load %arg8[%c0_16, %c0_17] : memref<32x128xf32, #tpu.memory_space<vmem>>, vector<32x128xf32>
    %c0_18 = arith.constant 0 : index
    %c0_19 = arith.constant 0 : index
    %12 = vector.load %arg9[%c0_18, %c0_19] : memref<1x128xf32, #tpu.memory_space<vmem>>, vector<1x128xf32>
    %c0_20 = arith.constant 0 : index
    %c0_21 = arith.constant 0 : index
    %13 = vector.load %arg1[%c0_20, %c0_21] : memref<2x32xf32, #tpu.memory_space<vmem>>, vector<2x32xf32>
    %c0_i32 = arith.constant 0 : i32
    %c2_i32 = arith.constant 2 : i32
    %14 = arith.muli %c0_i32, %c2_i32 : i32
    %15 = arith.index_cast %14 : i32 to index
    %c0_22 = arith.constant 0 : index
    %16 = vector.load %arg12[%15, %c0_22] : memref<8x96xf32, #tpu.memory_space<vmem>>, vector<2x96xf32>
    %cst_23 = arith.constant dense<0.000000e+00> : vector<2x96xf32>
    %17 = tpu.matmul %13, %7, %cst_23 {dimension_numbers = #tpu.dot_dimension_numbers<[1], [0], [0], [1], [0, 0, 1, 1], [], []>} : vector<2x32xf32>, vector<32x96xf32>, vector<2x96xf32> -> vector<2x96xf32>
    %18 = vector.broadcast %8 : vector<1x96xf32> to vector<2x96xf32>
    %19 = arith.addf %17, %18 : vector<2x96xf32>
    %20 = vector.extract_strided_slice %16 {offsets = [0, 0], sizes = [2, 32], strides = [1, 1]} : vector<2x96xf32> to vector<2x32xf32>
    %21 = vector.extract_strided_slice %19 {offsets = [0, 0], sizes = [2, 32], strides = [1, 1]} : vector<2x96xf32> to vector<2x32xf32>
    %22 = arith.addf %20, %21 : vector<2x32xf32>
    %23 = arith.negf %22 : vector<2x32xf32>
    %24 = math.exp %23 : vector<2x32xf32>
    %cst_24 = arith.constant 1.000000e+00 : f32
    %25 = vector.broadcast %cst_24 : f32 to vector<2x32xf32>
    %26 = arith.addf %25, %24 : vector<2x32xf32>
    %27 = arith.divf %25, %26 : vector<2x32xf32>
    %28 = vector.extract_strided_slice %16 {offsets = [0, 32], sizes = [2, 32], strides = [1, 1]} : vector<2x96xf32> to vector<2x32xf32>
    %29 = vector.extract_strided_slice %19 {offsets = [0, 32], sizes = [2, 32], strides = [1, 1]} : vector<2x96xf32> to vector<2x32xf32>
    %30 = arith.addf %28, %29 : vector<2x32xf32>
    %31 = arith.negf %30 : vector<2x32xf32>
    %32 = math.exp %31 : vector<2x32xf32>
    %cst_25 = arith.constant 1.000000e+00 : f32
    %33 = vector.broadcast %cst_25 : f32 to vector<2x32xf32>
    %34 = arith.addf %33, %32 : vector<2x32xf32>
    %35 = arith.divf %33, %34 : vector<2x32xf32>
    %36 = vector.extract_strided_slice %16 {offsets = [0, 64], sizes = [2, 32], strides = [1, 1]} : vector<2x96xf32> to vector<2x32xf32>
    %37 = vector.extract_strided_slice %19 {offsets = [0, 64], sizes = [2, 32], strides = [1, 1]} : vector<2x96xf32> to vector<2x32xf32>
    %38 = arith.mulf %27, %37 : vector<2x32xf32>
    %39 = arith.addf %36, %38 : vector<2x32xf32>
    %40 = math.tanh %39 : vector<2x32xf32>
    %cst_26 = arith.constant 1.000000e+00 : f32
    %41 = vector.broadcast %cst_26 : f32 to vector<2x32xf32>
    %42 = arith.subf %41, %35 : vector<2x32xf32>
    %43 = arith.mulf %42, %40 : vector<2x32xf32>
    %44 = arith.mulf %35, %13 : vector<2x32xf32>
    %45 = arith.addf %43, %44 : vector<2x32xf32>
    %46 = vector.shape_cast %45 : vector<2x32xf32> to vector<2x1x32xf32>
    "tpu.trace_start"() <{level = 10 : i32, message = "bqh,bsh->bqs"}> : () -> ()
    %cst_27 = arith.constant dense<0.000000e+00> : vector<2x1x8xf32>
    %47 = tpu.matmul %46, %9, %cst_27 {dimension_numbers = #tpu.dot_dimension_numbers<[2], [2], [1], [1], [0, 0, 0, 1, 1, 1], [0], [0]>} : vector<2x1x32xf32>, vector<2x8x32xf32>, vector<2x1x8xf32> -> vector<2x1x8xf32>
    "tpu.trace_stop"() : () -> ()
    %cst_28 = arith.constant dense<0xFF800000> : vector<2x1xf32>
    %48 = vector.multi_reduction <maximumf>, %47, %cst_28 [2] : vector<2x1x8xf32> to vector<2x1xf32>
    %49 = vector.shape_cast %48 : vector<2x1xf32> to vector<2x1x1xf32>
    %50 = vector.broadcast %49 : vector<2x1x1xf32> to vector<2x1x8xf32>
    %51 = arith.subf %47, %50 : vector<2x1x8xf32>
    %52 = math.exp %51 : vector<2x1x8xf32>
    %cst_29 = arith.constant dense<0.000000e+00> : vector<2x1xf32>
    %53 = vector.multi_reduction <add>, %52, %cst_29 [2] : vector<2x1x8xf32> to vector<2x1xf32>
    %54 = vector.shape_cast %53 : vector<2x1xf32> to vector<2x1x1xf32>
    %55 = tpu.reciprocal %54 {approx = true} : vector<2x1x1xf32> -> vector<2x1x1xf32>
    %56 = vector.broadcast %55 : vector<2x1x1xf32> to vector<2x1x8xf32>
    %57 = arith.mulf %52, %56 : vector<2x1x8xf32>
    "tpu.trace_start"() <{level = 10 : i32, message = "bqs,bsh->bqh"}> : () -> ()
    %cst_30 = arith.constant dense<0.000000e+00> : vector<2x1x32xf32>
    %58 = tpu.matmul %57, %9, %cst_30 {dimension_numbers = #tpu.dot_dimension_numbers<[2], [1], [1], [2], [0, 0, 0, 1, 1, 2], [0], [0]>} : vector<2x1x8xf32>, vector<2x8x32xf32>, vector<2x1x32xf32> -> vector<2x1x32xf32>
    "tpu.trace_stop"() : () -> ()
    %59 = vector.shape_cast %58 : vector<2x1x32xf32> to vector<2x32xf32>
    %cst_31 = arith.constant dense<0.000000e+00> : vector<2x128xf32>
    %60 = tpu.matmul %45, %10, %cst_31 {dimension_numbers = #tpu.dot_dimension_numbers<[1], [0], [0], [1], [0, 0, 1, 1], [], []>} : vector<2x32xf32>, vector<32x128xf32>, vector<2x128xf32> -> vector<2x128xf32>
    %cst_32 = arith.constant dense<0.000000e+00> : vector<2x128xf32>
    %61 = tpu.matmul %59, %11, %cst_32 {dimension_numbers = #tpu.dot_dimension_numbers<[1], [0], [0], [1], [0, 0, 1, 1], [], []>} : vector<2x32xf32>, vector<32x128xf32>, vector<2x128xf32> -> vector<2x128xf32>
    %62 = arith.addf %60, %61 : vector<2x128xf32>
    %63 = vector.broadcast %12 : vector<1x128xf32> to vector<2x128xf32>
    %64 = arith.addf %62, %63 : vector<2x128xf32>
    %cst_33 = arith.constant dense<0xFF800000> : vector<2xf32>
    %65 = vector.multi_reduction <maximumf>, %64, %cst_33 [1] : vector<2x128xf32> to vector<2xf32>
    %66 = vector.shape_cast %65 : vector<2xf32> to vector<2x1xf32>
    %67 = vector.broadcast %66 : vector<2x1xf32> to vector<2x128xf32>
    %68 = arith.subf %64, %67 : vector<2x128xf32>
    %69 = math.exp %68 : vector<2x128xf32>
    %cst_34 = arith.constant dense<0.000000e+00> : vector<2xf32>
    %70 = vector.multi_reduction <add>, %69, %cst_34 [1] : vector<2x128xf32> to vector<2xf32>
    %71 = vector.shape_cast %70 : vector<2xf32> to vector<2x1xf32>
    %72 = math.log %71 : vector<2x1xf32>
    %73 = arith.addf %72, %66 : vector<2x1xf32>
    %74 = vector.broadcast %73 : vector<2x1xf32> to vector<2x128xf32>
    %75 = arith.subf %64, %74 : vector<2x128xf32>
    %76 = arith.index_cast %c0_i32 : i32 to index
    %c0_35 = arith.constant 0 : index
    %c0_36 = arith.constant 0 : index
    %77 = vector.load %arg10[%76, %c0_35, %c0_36] : memref<4x2x128xf32, #tpu.memory_space<vmem>>, vector<1x2x128xf32>
    %78 = vector.shape_cast %77 : vector<1x2x128xf32> to vector<2x128xf32>
    %79 = vector.shape_cast %75 : vector<2x128xf32> to vector<1x2x128xf32>
    tpu.vector_store %arg10[%76, %c0_35, %c0_36], %79 {strides = array<i32>} : memref<4x2x128xf32, #tpu.memory_space<vmem>>, vector<1x2x128xf32>,
    %c1_i32 = arith.constant 1 : i32
    %c2_i32_37 = arith.constant 2 : i32
    %80 = arith.muli %c1_i32, %c2_i32_37 : i32
    %81 = arith.index_cast %80 : i32 to index
    %c0_38 = arith.constant 0 : index
    %82 = vector.load %arg12[%81, %c0_38] : memref<8x96xf32, #tpu.memory_space<vmem>>, vector<2x96xf32>
    %cst_39 = arith.constant dense<0.000000e+00> : vector<2x96xf32>
    %83 = tpu.matmul %45, %7, %cst_39 {dimension_numbers = #tpu.dot_dimension_numbers<[1], [0], [0], [1], [0, 0, 1, 1], [], []>} : vector<2x32xf32>, vector<32x96xf32>, vector<2x96xf32> -> vector<2x96xf32>
    %84 = vector.broadcast %8 : vector<1x96xf32> to vector<2x96xf32>
    %85 = arith.addf %83, %84 : vector<2x96xf32>
    %86 = vector.extract_strided_slice %82 {offsets = [0, 0], sizes = [2, 32], strides = [1, 1]} : vector<2x96xf32> to vector<2x32xf32>
    %87 = vector.extract_strided_slice %85 {offsets = [0, 0], sizes = [2, 32], strides = [1, 1]} : vector<2x96xf32> to vector<2x32xf32>
    %88 = arith.addf %86, %87 : vector<2x32xf32>
    %89 = arith.negf %88 : vector<2x32xf32>
    %90 = math.exp %89 : vector<2x32xf32>
    %cst_40 = arith.constant 1.000000e+00 : f32
    %91 = vector.broadcast %cst_40 : f32 to vector<2x32xf32>
    %92 = arith.addf %91, %90 : vector<2x32xf32>
    %93 = arith.divf %91, %92 : vector<2x32xf32>
    %94 = vector.extract_strided_slice %82 {offsets = [0, 32], sizes = [2, 32], strides = [1, 1]} : vector<2x96xf32> to vector<2x32xf32>
    %95 = vector.extract_strided_slice %85 {offsets = [0, 32], sizes = [2, 32], strides = [1, 1]} : vector<2x96xf32> to vector<2x32xf32>
    %96 = arith.addf %94, %95 : vector<2x32xf32>
    %97 = arith.negf %96 : vector<2x32xf32>
    %98 = math.exp %97 : vector<2x32xf32>
    %cst_41 = arith.constant 1.000000e+00 : f32
    %99 = vector.broadcast %cst_41 : f32 to vector<2x32xf32>
    %100 = arith.addf %99, %98 : vector<2x32xf32>
    %101 = arith.divf %99, %100 : vector<2x32xf32>
    %102 = vector.extract_strided_slice %82 {offsets = [0, 64], sizes = [2, 32], strides = [1, 1]} : vector<2x96xf32> to vector<2x32xf32>
    %103 = vector.extract_strided_slice %85 {offsets = [0, 64], sizes = [2, 32], strides = [1, 1]} : vector<2x96xf32> to vector<2x32xf32>
    %104 = arith.mulf %93, %103 : vector<2x32xf32>
    %105 = arith.addf %102, %104 : vector<2x32xf32>
    %106 = math.tanh %105 : vector<2x32xf32>
    %cst_42 = arith.constant 1.000000e+00 : f32
    %107 = vector.broadcast %cst_42 : f32 to vector<2x32xf32>
    %108 = arith.subf %107, %101 : vector<2x32xf32>
    %109 = arith.mulf %108, %106 : vector<2x32xf32>
    %110 = arith.mulf %101, %45 : vector<2x32xf32>
    %111 = arith.addf %109, %110 : vector<2x32xf32>
    %112 = vector.shape_cast %111 : vector<2x32xf32> to vector<2x1x32xf32>
    "tpu.trace_start"() <{level = 10 : i32, message = "bqh,bsh->bqs"}> : () -> ()
    %cst_43 = arith.constant dense<0.000000e+00> : vector<2x1x8xf32>
    %113 = tpu.matmul %112, %9, %cst_43 {dimension_numbers = #tpu.dot_dimension_numbers<[2], [2], [1], [1], [0, 0, 0, 1, 1, 1], [0], [0]>} : vector<2x1x32xf32>, vector<2x8x32xf32>, vector<2x1x8xf32> -> vector<2x1x8xf32>
    "tpu.trace_stop"() : () -> ()
    %cst_44 = arith.constant dense<0xFF800000> : vector<2x1xf32>
    %114 = vector.multi_reduction <maximumf>, %113, %cst_44 [2] : vector<2x1x8xf32> to vector<2x1xf32>
    %115 = vector.shape_cast %114 : vector<2x1xf32> to vector<2x1x1xf32>
    %116 = vector.broadcast %115 : vector<2x1x1xf32> to vector<2x1x8xf32>
    %117 = arith.subf %113, %116 : vector<2x1x8xf32>
    %118 = math.exp %117 : vector<2x1x8xf32>
    %cst_45 = arith.constant dense<0.000000e+00> : vector<2x1xf32>
    %119 = vector.multi_reduction <add>, %118, %cst_45 [2] : vector<2x1x8xf32> to vector<2x1xf32>
    %120 = vector.shape_cast %119 : vector<2x1xf32> to vector<2x1x1xf32>
    %121 = tpu.reciprocal %120 {approx = true} : vector<2x1x1xf32> -> vector<2x1x1xf32>
    %122 = vector.broadcast %121 : vector<2x1x1xf32> to vector<2x1x8xf32>
    %123 = arith.mulf %118, %122 : vector<2x1x8xf32>
    "tpu.trace_start"() <{level = 10 : i32, message = "bqs,bsh->bqh"}> : () -> ()
    %cst_46 = arith.constant dense<0.000000e+00> : vector<2x1x32xf32>
    %124 = tpu.matmul %123, %9, %cst_46 {dimension_numbers = #tpu.dot_dimension_numbers<[2], [1], [1], [2], [0, 0, 0, 1, 1, 2], [0], [0]>} : vector<2x1x8xf32>, vector<2x8x32xf32>, vector<2x1x32xf32> -> vector<2x1x32xf32>
    "tpu.trace_stop"() : () -> ()
    %125 = vector.shape_cast %124 : vector<2x1x32xf32> to vector<2x32xf32>
    %cst_47 = arith.constant dense<0.000000e+00> : vector<2x128xf32>
    %126 = tpu.matmul %111, %10, %cst_47 {dimension_numbers = #tpu.dot_dimension_numbers<[1], [0], [0], [1], [0, 0, 1, 1], [], []>} : vector<2x32xf32>, vector<32x128xf32>, vector<2x128xf32> -> vector<2x128xf32>
    %cst_48 = arith.constant dense<0.000000e+00> : vector<2x128xf32>
    %127 = tpu.matmul %125, %11, %cst_48 {dimension_numbers = #tpu.dot_dimension_numbers<[1], [0], [0], [1], [0, 0, 1, 1], [], []>} : vector<2x32xf32>, vector<32x128xf32>, vector<2x128xf32> -> vector<2x128xf32>
    %128 = arith.addf %126, %127 : vector<2x128xf32>
    %129 = vector.broadcast %12 : vector<1x128xf32> to vector<2x128xf32>
    %130 = arith.addf %128, %129 : vector<2x128xf32>
    %cst_49 = arith.constant dense<0xFF800000> : vector<2xf32>
    %131 = vector.multi_reduction <maximumf>, %130, %cst_49 [1] : vector<2x128xf32> to vector<2xf32>
    %132 = vector.shape_cast %131 : vector<2xf32> to vector<2x1xf32>
    %133 = vector.broadcast %132 : vector<2x1xf32> to vector<2x128xf32>
    %134 = arith.subf %130, %133 : vector<2x128xf32>
    %135 = math.exp %134 : vector<2x128xf32>
    %cst_50 = arith.constant dense<0.000000e+00> : vector<2xf32>
    %136 = vector.multi_reduction <add>, %135, %cst_50 [1] : vector<2x128xf32> to vector<2xf32>
    %137 = vector.shape_cast %136 : vector<2xf32> to vector<2x1xf32>
    %138 = math.log %137 : vector<2x1xf32>
    %139 = arith.addf %138, %132 : vector<2x1xf32>
    %140 = vector.broadcast %139 : vector<2x1xf32> to vector<2x128xf32>
    %141 = arith.subf %130, %140 : vector<2x128xf32>
    %142 = arith.index_cast %c1_i32 : i32 to index
    %c0_51 = arith.constant 0 : index
    %c0_52 = arith.constant 0 : index
    %143 = vector.load %arg10[%142, %c0_51, %c0_52] : memref<4x2x128xf32, #tpu.memory_space<vmem>>, vector<1x2x128xf32>
    %144 = vector.shape_cast %143 : vector<1x2x128xf32> to vector<2x128xf32>
    %145 = vector.shape_cast %141 : vector<2x128xf32> to vector<1x2x128xf32>
    tpu.vector_store %arg10[%142, %c0_51, %c0_52], %145 {strides = array<i32>} : memref<4x2x128xf32, #tpu.memory_space<vmem>>, vector<1x2x128xf32>,
    %c2_i32_53 = arith.constant 2 : i32
    %c2_i32_54 = arith.constant 2 : i32
    %146 = arith.muli %c2_i32_53, %c2_i32_54 : i32
    %147 = arith.index_cast %146 : i32 to index
    %c0_55 = arith.constant 0 : index
    %148 = vector.load %arg12[%147, %c0_55] : memref<8x96xf32, #tpu.memory_space<vmem>>, vector<2x96xf32>
    %cst_56 = arith.constant dense<0.000000e+00> : vector<2x96xf32>
    %149 = tpu.matmul %111, %7, %cst_56 {dimension_numbers = #tpu.dot_dimension_numbers<[1], [0], [0], [1], [0, 0, 1, 1], [], []>} : vector<2x32xf32>, vector<32x96xf32>, vector<2x96xf32> -> vector<2x96xf32>
    %150 = vector.broadcast %8 : vector<1x96xf32> to vector<2x96xf32>
    %151 = arith.addf %149, %150 : vector<2x96xf32>
    %152 = vector.extract_strided_slice %148 {offsets = [0, 0], sizes = [2, 32], strides = [1, 1]} : vector<2x96xf32> to vector<2x32xf32>
    %153 = vector.extract_strided_slice %151 {offsets = [0, 0], sizes = [2, 32], strides = [1, 1]} : vector<2x96xf32> to vector<2x32xf32>
    %154 = arith.addf %152, %153 : vector<2x32xf32>
    %155 = arith.negf %154 : vector<2x32xf32>
    %156 = math.exp %155 : vector<2x32xf32>
    %cst_57 = arith.constant 1.000000e+00 : f32
    %157 = vector.broadcast %cst_57 : f32 to vector<2x32xf32>
    %158 = arith.addf %157, %156 : vector<2x32xf32>
    %159 = arith.divf %157, %158 : vector<2x32xf32>
    %160 = vector.extract_strided_slice %148 {offsets = [0, 32], sizes = [2, 32], strides = [1, 1]} : vector<2x96xf32> to vector<2x32xf32>
    %161 = vector.extract_strided_slice %151 {offsets = [0, 32], sizes = [2, 32], strides = [1, 1]} : vector<2x96xf32> to vector<2x32xf32>
    %162 = arith.addf %160, %161 : vector<2x32xf32>
    %163 = arith.negf %162 : vector<2x32xf32>
    %164 = math.exp %163 : vector<2x32xf32>
    %cst_58 = arith.constant 1.000000e+00 : f32
    %165 = vector.broadcast %cst_58 : f32 to vector<2x32xf32>
    %166 = arith.addf %165, %164 : vector<2x32xf32>
    %167 = arith.divf %165, %166 : vector<2x32xf32>
    %168 = vector.extract_strided_slice %148 {offsets = [0, 64], sizes = [2, 32], strides = [1, 1]} : vector<2x96xf32> to vector<2x32xf32>
    %169 = vector.extract_strided_slice %151 {offsets = [0, 64], sizes = [2, 32], strides = [1, 1]} : vector<2x96xf32> to vector<2x32xf32>
    %170 = arith.mulf %159, %169 : vector<2x32xf32>
    %171 = arith.addf %168, %170 : vector<2x32xf32>
    %172 = math.tanh %171 : vector<2x32xf32>
    %cst_59 = arith.constant 1.000000e+00 : f32
    %173 = vector.broadcast %cst_59 : f32 to vector<2x32xf32>
    %174 = arith.subf %173, %167 : vector<2x32xf32>
    %175 = arith.mulf %174, %172 : vector<2x32xf32>
    %176 = arith.mulf %167, %111 : vector<2x32xf32>
    %177 = arith.addf %175, %176 : vector<2x32xf32>
    %178 = vector.shape_cast %177 : vector<2x32xf32> to vector<2x1x32xf32>
    "tpu.trace_start"() <{level = 10 : i32, message = "bqh,bsh->bqs"}> : () -> ()
    %cst_60 = arith.constant dense<0.000000e+00> : vector<2x1x8xf32>
    %179 = tpu.matmul %178, %9, %cst_60 {dimension_numbers = #tpu.dot_dimension_numbers<[2], [2], [1], [1], [0, 0, 0, 1, 1, 1], [0], [0]>} : vector<2x1x32xf32>, vector<2x8x32xf32>, vector<2x1x8xf32> -> vector<2x1x8xf32>
    "tpu.trace_stop"() : () -> ()
    %cst_61 = arith.constant dense<0xFF800000> : vector<2x1xf32>
    %180 = vector.multi_reduction <maximumf>, %179, %cst_61 [2] : vector<2x1x8xf32> to vector<2x1xf32>
    %181 = vector.shape_cast %180 : vector<2x1xf32> to vector<2x1x1xf32>
    %182 = vector.broadcast %181 : vector<2x1x1xf32> to vector<2x1x8xf32>
    %183 = arith.subf %179, %182 : vector<2x1x8xf32>
    %184 = math.exp %183 : vector<2x1x8xf32>
    %cst_62 = arith.constant dense<0.000000e+00> : vector<2x1xf32>
    %185 = vector.multi_reduction <add>, %184, %cst_62 [2] : vector<2x1x8xf32> to vector<2x1xf32>
    %186 = vector.shape_cast %185 : vector<2x1xf32> to vector<2x1x1xf32>
    %187 = tpu.reciprocal %186 {approx = true} : vector<2x1x1xf32> -> vector<2x1x1xf32>
    %188 = vector.broadcast %187 : vector<2x1x1xf32> to vector<2x1x8xf32>
    %189 = arith.mulf %184, %188 : vector<2x1x8xf32>
    "tpu.trace_start"() <{level = 10 : i32, message = "bqs,bsh->bqh"}> : () -> ()
    %cst_63 = arith.constant dense<0.000000e+00> : vector<2x1x32xf32>
    %190 = tpu.matmul %189, %9, %cst_63 {dimension_numbers = #tpu.dot_dimension_numbers<[2], [1], [1], [2], [0, 0, 0, 1, 1, 2], [0], [0]>} : vector<2x1x8xf32>, vector<2x8x32xf32>, vector<2x1x32xf32> -> vector<2x1x32xf32>
    "tpu.trace_stop"() : () -> ()
    %191 = vector.shape_cast %190 : vector<2x1x32xf32> to vector<2x32xf32>
    %cst_64 = arith.constant dense<0.000000e+00> : vector<2x128xf32>
    %192 = tpu.matmul %177, %10, %cst_64 {dimension_numbers = #tpu.dot_dimension_numbers<[1], [0], [0], [1], [0, 0, 1, 1], [], []>} : vector<2x32xf32>, vector<32x128xf32>, vector<2x128xf32> -> vector<2x128xf32>
    %cst_65 = arith.constant dense<0.000000e+00> : vector<2x128xf32>
    %193 = tpu.matmul %191, %11, %cst_65 {dimension_numbers = #tpu.dot_dimension_numbers<[1], [0], [0], [1], [0, 0, 1, 1], [], []>} : vector<2x32xf32>, vector<32x128xf32>, vector<2x128xf32> -> vector<2x128xf32>
    %194 = arith.addf %192, %193 : vector<2x128xf32>
    %195 = vector.broadcast %12 : vector<1x128xf32> to vector<2x128xf32>
    %196 = arith.addf %194, %195 : vector<2x128xf32>
    %cst_66 = arith.constant dense<0xFF800000> : vector<2xf32>
    %197 = vector.multi_reduction <maximumf>, %196, %cst_66 [1] : vector<2x128xf32> to vector<2xf32>
    %198 = vector.shape_cast %197 : vector<2xf32> to vector<2x1xf32>
    %199 = vector.broadcast %198 : vector<2x1xf32> to vector<2x128xf32>
    %200 = arith.subf %196, %199 : vector<2x128xf32>
    %201 = math.exp %200 : vector<2x128xf32>
    %cst_67 = arith.constant dense<0.000000e+00> : vector<2xf32>
    %202 = vector.multi_reduction <add>, %201, %cst_67 [1] : vector<2x128xf32> to vector<2xf32>
    %203 = vector.shape_cast %202 : vector<2xf32> to vector<2x1xf32>
    %204 = math.log %203 : vector<2x1xf32>
    %205 = arith.addf %204, %198 : vector<2x1xf32>
    %206 = vector.broadcast %205 : vector<2x1xf32> to vector<2x128xf32>
    %207 = arith.subf %196, %206 : vector<2x128xf32>
    %208 = arith.index_cast %c2_i32_53 : i32 to index
    %c0_68 = arith.constant 0 : index
    %c0_69 = arith.constant 0 : index
    %209 = vector.load %arg10[%208, %c0_68, %c0_69] : memref<4x2x128xf32, #tpu.memory_space<vmem>>, vector<1x2x128xf32>
    %210 = vector.shape_cast %209 : vector<1x2x128xf32> to vector<2x128xf32>
    %211 = vector.shape_cast %207 : vector<2x128xf32> to vector<1x2x128xf32>
    tpu.vector_store %arg10[%208, %c0_68, %c0_69], %211 {strides = array<i32>} : memref<4x2x128xf32, #tpu.memory_space<vmem>>, vector<1x2x128xf32>,
    %c3_i32 = arith.constant 3 : i32
    %c2_i32_70 = arith.constant 2 : i32
    %212 = arith.muli %c3_i32, %c2_i32_70 : i32
    %213 = arith.index_cast %212 : i32 to index
    %c0_71 = arith.constant 0 : index
    %214 = vector.load %arg12[%213, %c0_71] : memref<8x96xf32, #tpu.memory_space<vmem>>, vector<2x96xf32>
    %cst_72 = arith.constant dense<0.000000e+00> : vector<2x96xf32>
    %215 = tpu.matmul %177, %7, %cst_72 {dimension_numbers = #tpu.dot_dimension_numbers<[1], [0], [0], [1], [0, 0, 1, 1], [], []>} : vector<2x32xf32>, vector<32x96xf32>, vector<2x96xf32> -> vector<2x96xf32>
    %216 = vector.broadcast %8 : vector<1x96xf32> to vector<2x96xf32>
    %217 = arith.addf %215, %216 : vector<2x96xf32>
    %218 = vector.extract_strided_slice %214 {offsets = [0, 0], sizes = [2, 32], strides = [1, 1]} : vector<2x96xf32> to vector<2x32xf32>
    %219 = vector.extract_strided_slice %217 {offsets = [0, 0], sizes = [2, 32], strides = [1, 1]} : vector<2x96xf32> to vector<2x32xf32>
    %220 = arith.addf %218, %219 : vector<2x32xf32>
    %221 = arith.negf %220 : vector<2x32xf32>
    %222 = math.exp %221 : vector<2x32xf32>
    %cst_73 = arith.constant 1.000000e+00 : f32
    %223 = vector.broadcast %cst_73 : f32 to vector<2x32xf32>
    %224 = arith.addf %223, %222 : vector<2x32xf32>
    %225 = arith.divf %223, %224 : vector<2x32xf32>
    %226 = vector.extract_strided_slice %214 {offsets = [0, 32], sizes = [2, 32], strides = [1, 1]} : vector<2x96xf32> to vector<2x32xf32>
    %227 = vector.extract_strided_slice %217 {offsets = [0, 32], sizes = [2, 32], strides = [1, 1]} : vector<2x96xf32> to vector<2x32xf32>
    %228 = arith.addf %226, %227 : vector<2x32xf32>
    %229 = arith.negf %228 : vector<2x32xf32>
    %230 = math.exp %229 : vector<2x32xf32>
    %cst_74 = arith.constant 1.000000e+00 : f32
    %231 = vector.broadcast %cst_74 : f32 to vector<2x32xf32>
    %232 = arith.addf %231, %230 : vector<2x32xf32>
    %233 = arith.divf %231, %232 : vector<2x32xf32>
    %234 = vector.extract_strided_slice %214 {offsets = [0, 64], sizes = [2, 32], strides = [1, 1]} : vector<2x96xf32> to vector<2x32xf32>
    %235 = vector.extract_strided_slice %217 {offsets = [0, 64], sizes = [2, 32], strides = [1, 1]} : vector<2x96xf32> to vector<2x32xf32>
    %236 = arith.mulf %225, %235 : vector<2x32xf32>
    %237 = arith.addf %234, %236 : vector<2x32xf32>
    %238 = math.tanh %237 : vector<2x32xf32>
    %cst_75 = arith.constant 1.000000e+00 : f32
    %239 = vector.broadcast %cst_75 : f32 to vector<2x32xf32>
    %240 = arith.subf %239, %233 : vector<2x32xf32>
    %241 = arith.mulf %240, %238 : vector<2x32xf32>
    %242 = arith.mulf %233, %177 : vector<2x32xf32>
    %243 = arith.addf %241, %242 : vector<2x32xf32>
    %244 = vector.shape_cast %243 : vector<2x32xf32> to vector<2x1x32xf32>
    "tpu.trace_start"() <{level = 10 : i32, message = "bqh,bsh->bqs"}> : () -> ()
    %cst_76 = arith.constant dense<0.000000e+00> : vector<2x1x8xf32>
    %245 = tpu.matmul %244, %9, %cst_76 {dimension_numbers = #tpu.dot_dimension_numbers<[2], [2], [1], [1], [0, 0, 0, 1, 1, 1], [0], [0]>} : vector<2x1x32xf32>, vector<2x8x32xf32>, vector<2x1x8xf32> -> vector<2x1x8xf32>
    "tpu.trace_stop"() : () -> ()
    %cst_77 = arith.constant dense<0xFF800000> : vector<2x1xf32>
    %246 = vector.multi_reduction <maximumf>, %245, %cst_77 [2] : vector<2x1x8xf32> to vector<2x1xf32>
    %247 = vector.shape_cast %246 : vector<2x1xf32> to vector<2x1x1xf32>
    %248 = vector.broadcast %247 : vector<2x1x1xf32> to vector<2x1x8xf32>
    %249 = arith.subf %245, %248 : vector<2x1x8xf32>
    %250 = math.exp %249 : vector<2x1x8xf32>
    %cst_78 = arith.constant dense<0.000000e+00> : vector<2x1xf32>
    %251 = vector.multi_reduction <add>, %250, %cst_78 [2] : vector<2x1x8xf32> to vector<2x1xf32>
    %252 = vector.shape_cast %251 : vector<2x1xf32> to vector<2x1x1xf32>
    %253 = tpu.reciprocal %252 {approx = true} : vector<2x1x1xf32> -> vector<2x1x1xf32>
    %254 = vector.broadcast %253 : vector<2x1x1xf32> to vector<2x1x8xf32>
    %255 = arith.mulf %250, %254 : vector<2x1x8xf32>
    "tpu.trace_start"() <{level = 10 : i32, message = "bqs,bsh->bqh"}> : () -> ()
    %cst_79 = arith.constant dense<0.000000e+00> : vector<2x1x32xf32>
    %256 = tpu.matmul %255, %9, %cst_79 {dimension_numbers = #tpu.dot_dimension_numbers<[2], [1], [1], [2], [0, 0, 0, 1, 1, 2], [0], [0]>} : vector<2x1x8xf32>, vector<2x8x32xf32>, vector<2x1x32xf32> -> vector<2x1x32xf32>
    "tpu.trace_stop"() : () -> ()
    %257 = vector.shape_cast %256 : vector<2x1x32xf32> to vector<2x32xf32>
    %cst_80 = arith.constant dense<0.000000e+00> : vector<2x128xf32>
    %258 = tpu.matmul %243, %10, %cst_80 {dimension_numbers = #tpu.dot_dimension_numbers<[1], [0], [0], [1], [0, 0, 1, 1], [], []>} : vector<2x32xf32>, vector<32x128xf32>, vector<2x128xf32> -> vector<2x128xf32>
    %cst_81 = arith.constant dense<0.000000e+00> : vector<2x128xf32>
    %259 = tpu.matmul %257, %11, %cst_81 {dimension_numbers = #tpu.dot_dimension_numbers<[1], [0], [0], [1], [0, 0, 1, 1], [], []>} : vector<2x32xf32>, vector<32x128xf32>, vector<2x128xf32> -> vector<2x128xf32>
    %260 = arith.addf %258, %259 : vector<2x128xf32>
    %261 = vector.broadcast %12 : vector<1x128xf32> to vector<2x128xf32>
    %262 = arith.addf %260, %261 : vector<2x128xf32>
    %cst_82 = arith.constant dense<0xFF800000> : vector<2xf32>
    %263 = vector.multi_reduction <maximumf>, %262, %cst_82 [1] : vector<2x128xf32> to vector<2xf32>
    %264 = vector.shape_cast %263 : vector<2xf32> to vector<2x1xf32>
    %265 = vector.broadcast %264 : vector<2x1xf32> to vector<2x128xf32>
    %266 = arith.subf %262, %265 : vector<2x128xf32>
    %267 = math.exp %266 : vector<2x128xf32>
    %cst_83 = arith.constant dense<0.000000e+00> : vector<2xf32>
    %268 = vector.multi_reduction <add>, %267, %cst_83 [1] : vector<2x128xf32> to vector<2xf32>
    %269 = vector.shape_cast %268 : vector<2xf32> to vector<2x1xf32>
    %270 = math.log %269 : vector<2x1xf32>
    %271 = arith.addf %270, %264 : vector<2x1xf32>
    %272 = vector.broadcast %271 : vector<2x1xf32> to vector<2x128xf32>
    %273 = arith.subf %262, %272 : vector<2x128xf32>
    %274 = arith.index_cast %c3_i32 : i32 to index
    %c0_84 = arith.constant 0 : index
    %c0_85 = arith.constant 0 : index
    %275 = vector.load %arg10[%274, %c0_84, %c0_85] : memref<4x2x128xf32, #tpu.memory_space<vmem>>, vector<1x2x128xf32>
    %276 = vector.shape_cast %275 : vector<1x2x128xf32> to vector<2x128xf32>
    %277 = vector.shape_cast %273 : vector<2x128xf32> to vector<1x2x128xf32>
    tpu.vector_store %arg10[%274, %c0_84, %c0_85], %277 {strides = array<i32>} : memref<4x2x128xf32, #tpu.memory_space<vmem>>, vector<1x2x128xf32>,
    %c4_i32 = arith.constant 4 : i32
    %c0_86 = arith.constant 0 : index
    %c0_87 = arith.constant 0 : index
    %278 = vector.load %arg11[%c0_86, %c0_87] : memref<2x32xf32, #tpu.memory_space<vmem>>, vector<2x32xf32>
    tpu.vector_store %arg11[%c0_86, %c0_87], %243 {strides = array<i32>} : memref<2x32xf32, #tpu.memory_space<vmem>>, vector<2x32xf32>,
    return
  }
}

</mosaic_0001>

<bundles_post_ra>
// kernel: translator_forward.2
= control target key start
LH: loop header
LB: loop body
LE: loop exit
PB: predicated region body
PF: predicated region fallthrough
CT: control target
= control target key end

     0   :  { %vm33_vm0 = vcmask 130048   ;;  %v1250_v0 = vmov 0.0|0.0   ;;  %vm1251_vm1 = vmmov 0   ;;  %v1252_v4 = vmov 0.0   ;;  %s1253_s14 = smov 64   ;;  %s1460_s1 = inlined_call_operand.vmem [shape: f32[16,96], index: 1, kind: input, shape index: {}]   ;;  %s1461_s2 = inlined_call_operand.vmem [shape: f32[32,96], index: 2, kind: input, shape index: {}]   ;;  %s1462_s0 = inlined_call_operand.vmem [shape: f32[16,16], index: 0, kind: input, shape index: {}]   ;;  %s1463_s3 = inlined_call_operand.vmem [shape: f32[1,96], index: 3, kind: input, shape index: {}]   ;;  %s1464_s4 = inlined_call_operand.vmem [shape: f32[1,96], index: 4, kind: input, shape index: {}]   ;;  %s1465_s5 = inlined_call_operand.vmem [shape: f32[8,2,32], index: 5, kind: output, shape index: {0}]   ;;  %s1466_s6 = inlined_call_operand.vmem [shape: f32[2,32], index: 6, kind: output, shape index: {1}]  }
   0x1   :  { %1149 = vmatprep.subr.bf16.mxu1 %v1250_v0  ;;  %v24_v1 = vld [vmem:[%s1460_s1] sm:$0xff]  ;;  %v25_v2 = vld [vmem:[%s1460_s1 + $0x8] sm:$0xff]  ;;  %1065 = vmatprep.mubr.msk.f32.mxu1 %vm1251_vm1, %v1252_v4  ;;  %v120_v9 = vld [vmem:[%s1461_s2 + $0x10] sm:$0xff]  ;;  %vm115_vm2 = vcmask 785408   ;;  %vm234_vm3 = vcmask 254976   ;;  %vm130_vm4 = vcmask 261120  }
   0x2   :  { %v118_v3 = vld [vmem:[%s1461_s2] sm:$0xff]  ;;  %v1145_v5 = vpack.c.bf16 %v25_v2, %v24_v1  ;;  %v119_v6 = vld [vmem:[%s1461_s2 + $0x8] sm:$0xff]  ;;  %v121_v10 = vld [vmem:[%s1461_s2 + $0x18] sm:$0xff] }
   0x3   :  { %v22_v7 = vld [vmem:[%s1462_s0] sm:$0xff]  ;;  %v1308_v8 = vpack.c.bf16 %v119_v6, %v118_v3  ;;  %v23_v11 = vld [vmem:[%s1462_s0 + $0x8] sm:$0xff]  ;;  %v1321_v12 = vpack.c.bf16 %v121_v10, %v120_v9 }
   0x4   :  { %1054 = vmatprep.mubr.msk.f32.mxu0 %vm33_vm0, %v22_v7  ;;  %1146 = vmatprep.subr.bf16.mxu0 %v1145_v5  ;;  %v980_v13 = vld [vmem:[%s1463_s3] ss:$0 sm:$0xff]  ;;  %s1254_s3 = smov 96  }
   0x5   :  { %1151 = vmatpush3.bf16.msra.mxu1 %v1308_v8  ;;  %1148 = vmatpush3.bf16.msra.mxu0 %v1145_v5  ;;  %v1347_v18 = vld [vmem:[%s1464_s4] ss:$0 sm:$0xff] }
   0x6   :  { %1152 = vmatprep.subr.bf16.mxu1 %v1250_v0  ;;  %1155 = vmatprep.subr.bf16.mxu0 %v1250_v0 }
   0x8   :  { %1055 = vmatmul.mubr.msk.f32.vlgmr.msra.gmra.mrb[0].mxu0 %vm33_vm0, %v23_v11 }
   0x9   :  { %1154 = vmatpush3.bf16.msra.mxu1 %v1321_v12  ;;  %1157 = vmatpush3.bf16.msra.mxu0 %v1308_v8 }
   0xa   :  { %1158 = vmatprep.subr.bf16.mxu0 %v1250_v0  ;;  %1076 = vmatprep.mubr.msk.f32.mxu0 %vm1251_vm1, %v1252_v4 }
   0xb   :  { %1161 = vmatprep.subr.bf16.mxu1 %v1250_v0 }
   0xc   :  { %1066 = vmatmul.mubr.f32.vlgmr.msra.gmra.mrb[0].mxu1 %v1252_v4 }
   0xd   :  { %1160 = vmatpush3.bf16.msra.mxu0 %v1321_v12  ;;  %1163 = vmatpush3.bf16.msra.mxu1 %v1308_v8 }
   0xe   :  { %1164 = vmatprep.subr.bf16.mxu1 %v1250_v0  ;;  %1087 = vmatprep.mubr.msk.f32.mxu1 %vm1251_vm1, %v1252_v4 }
   0xf   :  { %1167 = vmatprep.subr.bf16.mxu0 %v1250_v0 }
  0x11   :  { %1166 = vmatpush3.bf16.msra.mxu1 %v1321_v12 }
  0x12   :  { %1173 = vmatprep.subr.bf16.mxu1 %v1250_v0 }
  0xdb   :  { %v1056_v14 = vpop.f32.mrb[0].mxu0 }
  0xdc   :  { %v112_v15 = vadd.f32 %v1056_v14, %v980_v13  ;;  %v106_v16 = vpop.f32.mrb[1].mxu0 }
  0xdd   :  { %v107_v17 = vadd.f32 %v980_v13, %v106_v16 }
  0xde   :  { %117 = vst.msk [vmem:[#allocation2 + $0x8] sm:$0xff] %vm115_vm2, %v112_v15 }
  0xdf   :  { %116 = vst.msk [vmem:[#allocation2] sm:$0xff] %vm115_vm2, %v107_v17  ;;  %v200_v19 = vpop.f32.mrb[0].mxu1 }
  0xe0   :  { %v201_v20 = vadd.f32 %v1347_v18, %v200_v19  ;;  %v1067_v21 = vpop.f32.mrb[1].mxu1 }
  0xe2   :  { %212 = vrot.lane.b32.xlu0 %v201_v20, %s1253_s14 }
  0xe6   :  { %v123_v22 = vld [vmem:[#allocation2] sm:$0x3]  ;;  %v236_v42 = vld [vmem:[#allocation2 + $0x2] sm:$0x3]  ;;  %v341_v62 = vld [vmem:[#allocation2 + $0x4] sm:$0x3] }
  0xe7   :  { %v204_v23 = vadd.f32 %v201_v20, %v123_v22 }
  0xe9   :  { %v984_v24 = vmul.f32 -1.442695, %v204_v23  ;;  %v446_v23 = vld [vmem:[#allocation2 + $0x6] sm:$0x3] }
  0xeb   :  { %1202 = vpow2.f32 %v984_v24 }
  0xf5   :  { %v1203_v25 = vpop.eup %1202 }
  0xf6   :  { %v208_v26 = vadd.f32 1.0, %v1203_v25 }
  0xf8   :  { %1204 = vrcp.f32 %v208_v26 }
 0x102   :  { %v1205_v27 = vpop.eup %1204 }
 0x103   :  { %v222_v33 = vsub.f32 1.0, %v1205_v27  ;;  %v228_v35 = vmul.f32 0.0, %v1205_v27 }
 0x154   :  { %v213_v28 = vpop.permute.xlu0 %212 }
 0x155   :  { %v215_v29 = vmul.f32 %v1205_v27, %v213_v28 }
 0x157   :  { %217 = vrot.lane.b32.xlu0 %v215_v29, %s1253_s14 }
 0x1c9   :  { %v218_v30 = vpop.permute.xlu0 %217 }
 0x1ca   :  { %v220_v31 = vadd.f32 %v218_v30, %v123_v22 }
 0x1cc   :  { %1206 = vtanh.f32 %v220_v31 }
 0x1d6   :  { %v1207_v32 = vpop.eup %1206 }
 0x1d7   :  { %224 = vrot.lane.b32.xlu1 %v1207_v32, %s1254_s3 }
 0x249   :  { %v225_v34 = vpop.permute.xlu1 %224 }
 0x24a   :  { %v227_v36 = vmul.f32 %v225_v34, %v222_v33 }
 0x24c   :  { %v229_v37 = vadd.f32 %v228_v35, %v227_v36 }
 0x24e   :  { %231 = vrot.lane.b32.xlu1 %v229_v37, %s1254_s3 }
 0x2c0   :  { %v232_v38 = vpop.permute.xlu1 %231 }
 0x2c1   :  { %235 = vst.msk [vmem:[%s1465_s5] sm:$0x3] %vm234_vm3, %v232_v38  ;;  %1077 = vmatmul.mubr.msk.f32.vlgmr.msra.gmra.mrb[2].mxu0 %vm130_vm4, %v232_v38 }
 0x2c2   :  { %1169 = vmatpush3.bf16.msra.mxu0 %v1308_v8  ;;  %1098 = vmatprep.mubr.msk.f32.mxu0 %vm1251_vm1, %v1252_v4 }
 0x2c3   :  { %1170 = vmatprep.subr.bf16.mxu0 %v1250_v0 }
 0x2c6   :  { %1172 = vmatpush3.bf16.msra.mxu0 %v1321_v12 }
 0x2c7   :  { %1179 = vmatprep.subr.bf16.mxu0 %v1250_v0 }
 0x394   :  { %v305_v39 = vpop.f32.mrb[2].mxu0 }
 0x395   :  { %v306_v40 = vadd.f32 %v1347_v18, %v305_v39  ;;  %v1078_v41 = vpop.f32.mrb[3].mxu0 }
 0x397   :  { %317 = vrot.lane.b32.xlu0 %v306_v40, %s1253_s14  ;;  %v309_v43 = vadd.f32 %v306_v40, %v236_v42 }
 0x399   :  { %v986_v44 = vmul.f32 -1.442695, %v309_v43  ;;  %v551_v43 = vld [vmem:[#allocation2 + $0x8] sm:$0x3] }
 0x39b   :  { %1208 = vpow2.f32 %v986_v44 }
 0x3a5   :  { %v1209_v45 = vpop.eup %1208 }
 0x3a6   :  { %v313_v46 = vadd.f32 1.0, %v1209_v45 }
 0x3a8   :  { %1210 = vrcp.f32 %v313_v46 }
 0x3b2   :  { %v1211_v47 = vpop.eup %1210 }
 0x3b3   :  { %v327_v53 = vsub.f32 1.0, %v1211_v47  ;;  %v333_v55 = vmul.f32 %v1211_v47, %v229_v37 }
 0x409   :  { %v318_v48 = vpop.permute.xlu0 %317 }
 0x40a   :  { %v320_v49 = vmul.f32 %v1211_v47, %v318_v48 }
 0x40c   :  { %322 = vrot.lane.b32.xlu1 %v320_v49, %s1253_s14 }
 0x47e   :  { %v323_v50 = vpop.permute.xlu1 %322 }
 0x47f   :  { %v325_v51 = vadd.f32 %v323_v50, %v236_v42 }
 0x481   :  { %1212 = vtanh.f32 %v325_v51 }
 0x48b   :  { %v1213_v52 = vpop.eup %1212 }
 0x48c   :  { %329 = vrot.lane.b32.xlu0 %v1213_v52, %s1254_s3 }
 0x4fe   :  { %v330_v54 = vpop.permute.xlu0 %329 }
 0x4ff   :  { %v332_v56 = vmul.f32 %v330_v54, %v327_v53 }
 0x501   :  { %v334_v57 = vadd.f32 %v333_v55, %v332_v56 }
 0x503   :  { %336 = vrot.lane.b32.xlu1 %v334_v57, %s1254_s3 }
 0x575   :  { %v337_v58 = vpop.permute.xlu1 %336 }
 0x576   :  { %987 = vst.msk [vmem:[%s1465_s5 + $0x2] sm:$0x3] %vm234_vm3, %v337_v58  ;;  %1088 = vmatmul.mubr.msk.f32.vlgmr.msra.gmra.mrb[2].mxu1 %vm130_vm4, %v337_v58 }
 0x577   :  { %1175 = vmatpush3.bf16.msra.mxu1 %v1308_v8  ;;  %1109 = vmatprep.mubr.msk.f32.mxu1 %vm1251_vm1, %v1252_v4 }
 0x578   :  { %1176 = vmatprep.subr.bf16.mxu1 %v1250_v0 }
 0x57b   :  { %1178 = vmatpush3.bf16.msra.mxu1 %v1321_v12 }
 0x57c   :  { %1185 = vmatprep.subr.bf16.mxu1 %v1250_v0 }
 0x649   :  { %v410_v59 = vpop.f32.mrb[2].mxu1 }
 0x64a   :  { %v411_v60 = vadd.f32 %v1347_v18, %v410_v59  ;;  %v1089_v61 = vpop.f32.mrb[3].mxu1 }
 0x64c   :  { %422 = vrot.lane.b32.xlu0 %v411_v60, %s1253_s14  ;;  %v414_v63 = vadd.f32 %v411_v60, %v341_v62 }
 0x64e   :  { %v989_v1 = vmul.f32 -1.442695, %v414_v63  ;;  %v656_v63 = vld [vmem:[#allocation2 + $0xa] sm:$0x3] }
 0x650   :  { %1214 = vpow2.f32 %v989_v1 }
 0x65a   :  { %v1215_v2 = vpop.eup %1214 }
 0x65b   :  { %v418_v3 = vadd.f32 1.0, %v1215_v2 }
 0x65d   :  { %1216 = vrcp.f32 %v418_v3 }
 0x667   :  { %v1217_v5 = vpop.eup %1216 }
 0x668   :  { %v432_v13 = vsub.f32 1.0, %v1217_v5  ;;  %v438_v15 = vmul.f32 %v1217_v5, %v334_v57 }
 0x6be   :  { %v423_v6 = vpop.permute.xlu0 %422 }
 0x6bf   :  { %v425_v7 = vmul.f32 %v1217_v5, %v423_v6 }
 0x6c1   :  { %427 = vrot.lane.b32.xlu1 %v425_v7, %s1253_s14 }
 0x733   :  { %v428_v9 = vpop.permute.xlu1 %427 }
 0x734   :  { %v430_v10 = vadd.f32 %v428_v9, %v341_v62 }
 0x736   :  { %1218 = vtanh.f32 %v430_v10 }
 0x740   :  { %v1219_v11 = vpop.eup %1218 }
 0x741   :  { %434 = vrot.lane.b32.xlu0 %v1219_v11, %s1254_s3 }
 0x7b3   :  { %v435_v14 = vpop.permute.xlu0 %434 }
 0x7b4   :  { %v437_v16 = vmul.f32 %v435_v14, %v432_v13 }
 0x7b6   :  { %v439_v17 = vadd.f32 %v438_v15, %v437_v16 }
 0x7b8   :  { %441 = vrot.lane.b32.xlu1 %v439_v17, %s1254_s3 }
 0x82a   :  { %v442_v19 = vpop.permute.xlu1 %441 }
 0x82b   :  { %990 = vst.msk [vmem:[%s1465_s5 + $0x4] sm:$0x3] %vm234_vm3, %v442_v19  ;;  %1099 = vmatmul.mubr.msk.f32.vlgmr.msra.gmra.mrb[4].mxu0 %vm130_vm4, %v442_v19 }
 0x82c   :  { %1181 = vmatpush3.bf16.msra.mxu0 %v1308_v8  ;;  %1120 = vmatprep.mubr.msk.f32.mxu0 %vm1251_vm1, %v1252_v4 }
 0x82d   :  { %1182 = vmatprep.subr.bf16.mxu0 %v1250_v0 }
 0x830   :  { %1184 = vmatpush3.bf16.msra.mxu0 %v1321_v12 }
 0x831   :  { %1191 = vmatprep.subr.bf16.mxu0 %v1250_v0 }
 0x8fe   :  { %v515_v20 = vpop.f32.mrb[4].mxu0 }
 0x8ff   :  { %v516_v21 = vadd.f32 %v1347_v18, %v515_v20  ;;  %v1100_v22 = vpop.f32.mrb[5].mxu0  ;;  %v761_v20 = vld [vmem:[#allocation2 + $0xc] sm:$0x3] }
 0x901   :  { %527 = vrot.lane.b32.xlu0 %v516_v21, %s1253_s14  ;;  %v519_v24 = vadd.f32 %v516_v21, %v446_v23 }
 0x903   :  { %v992_v25 = vmul.f32 -1.442695, %v519_v24 }
 0x905   :  { %1220 = vpow2.f32 %v992_v25 }
 0x90f   :  { %v1221_v26 = vpop.eup %1220 }
 0x910   :  { %v523_v27 = vadd.f32 1.0, %v1221_v26 }
 0x912   :  { %1222 = vrcp.f32 %v523_v27 }
 0x91c   :  { %v1223_v28 = vpop.eup %1222 }
 0x91d   :  { %v537_v34 = vsub.f32 1.0, %v1223_v28  ;;  %v543_v36 = vmul.f32 %v1223_v28, %v439_v17 }
 0x973   :  { %v528_v29 = vpop.permute.xlu0 %527 }
 0x974   :  { %v530_v30 = vmul.f32 %v1223_v28, %v528_v29 }
 0x976   :  { %532 = vrot.lane.b32.xlu1 %v530_v30, %s1253_s14 }
 0x9e8   :  { %v533_v31 = vpop.permute.xlu1 %532 }
 0x9e9   :  { %v535_v32 = vadd.f32 %v533_v31, %v446_v23 }
 0x9eb   :  { %1224 = vtanh.f32 %v535_v32 }
 0x9f5   :  { %v1225_v33 = vpop.eup %1224 }
 0x9f6   :  { %539 = vrot.lane.b32.xlu0 %v1225_v33, %s1254_s3 }
 0xa68   :  { %v540_v35 = vpop.permute.xlu0 %539 }
 0xa69   :  { %v542_v37 = vmul.f32 %v540_v35, %v537_v34 }
 0xa6b   :  { %v544_v38 = vadd.f32 %v543_v36, %v542_v37 }
 0xa6d   :  { %546 = vrot.lane.b32.xlu1 %v544_v38, %s1254_s3 }
 0xadf   :  { %v547_v39 = vpop.permute.xlu1 %546 }
 0xae0   :  { %993 = vst.msk [vmem:[%s1465_s5 + $0x6] sm:$0x3] %vm234_vm3, %v547_v39  ;;  %1110 = vmatmul.mubr.msk.f32.vlgmr.msra.gmra.mrb[4].mxu1 %vm130_vm4, %v547_v39 }
 0xae1   :  { %1187 = vmatpush3.bf16.msra.mxu1 %v1308_v8  ;;  %1131 = vmatprep.mubr.msk.f32.mxu1 %vm1251_vm1, %v1252_v4 }
 0xae2   :  { %1188 = vmatprep.subr.bf16.mxu1 %v1250_v0 }
 0xae5   :  { %1190 = vmatpush3.bf16.msra.mxu1 %v1321_v12 }
 0xbb3   :  { %v620_v40 = vpop.f32.mrb[4].mxu1 }
 0xbb4   :  { %v621_v41 = vadd.f32 %v1347_v18, %v620_v40  ;;  %v1111_v42 = vpop.f32.mrb[5].mxu1  ;;  %v866_v40 = vld [vmem:[#allocation2 + $0xe] sm:$0x3] }
 0xbb6   :  { %632 = vrot.lane.b32.xlu0 %v621_v41, %s1253_s14  ;;  %v624_v44 = vadd.f32 %v621_v41, %v551_v43 }
 0xbb8   :  { %v995_v45 = vmul.f32 -1.442695, %v624_v44 }
 0xbba   :  { %1226 = vpow2.f32 %v995_v45 }
 0xbc4   :  { %v1227_v46 = vpop.eup %1226 }
 0xbc5   :  { %v628_v47 = vadd.f32 1.0, %v1227_v46 }
 0xbc7   :  { %1228 = vrcp.f32 %v628_v47 }
 0xbd1   :  { %v1229_v48 = vpop.eup %1228 }
 0xbd2   :  { %v642_v54 = vsub.f32 1.0, %v1229_v48  ;;  %v648_v56 = vmul.f32 %v1229_v48, %v544_v38 }
 0xc28   :  { %v633_v49 = vpop.permute.xlu0 %632 }
 0xc29   :  { %v635_v50 = vmul.f32 %v1229_v48, %v633_v49 }
 0xc2b   :  { %637 = vrot.lane.b32.xlu1 %v635_v50, %s1253_s14 }
 0xc9d   :  { %v638_v51 = vpop.permute.xlu1 %637 }
 0xc9e   :  { %v640_v52 = vadd.f32 %v638_v51, %v551_v43 }
 0xca0   :  { %1230 = vtanh.f32 %v640_v52 }
 0xcaa   :  { %v1231_v53 = vpop.eup %1230 }
 0xcab   :  { %644 = vrot.lane.b32.xlu0 %v1231_v53, %s1254_s3 }
 0xd1d   :  { %v645_v55 = vpop.permute.xlu0 %644 }
 0xd1e   :  { %v647_v57 = vmul.f32 %v645_v55, %v642_v54 }
 0xd20   :  { %v649_v58 = vadd.f32 %v648_v56, %v647_v57 }
 0xd22   :  { %651 = vrot.lane.b32.xlu1 %v649_v58, %s1254_s3 }
 0xd94   :  { %v652_v59 = vpop.permute.xlu1 %651 }
 0xd95   :  { %996 = vst.msk [vmem:[%s1465_s5 + $0x8] sm:$0x3] %vm234_vm3, %v652_v59  ;;  %1121 = vmatmul.mubr.msk.f32.vlgmr.msra.gmra.mrb[6].mxu0 %vm130_vm4, %v652_v59 }
 0xd96   :  { %1193 = vmatpush3.bf16.msra.mxu0 %v1308_v8  ;;  %1142 = vmatprep.mubr.msk.f32.mxu0 %vm1251_vm1, %v1252_v4 }
 0xd97   :  { %1194 = vmatprep.subr.bf16.mxu0 %v1250_v0 }
 0xd9a   :  { %1196 = vmatpush3.bf16.msra.mxu0 %v1321_v12 }
 0xe68   :  { %v725_v60 = vpop.f32.mrb[6].mxu0 }
 0xe69   :  { %v726_v61 = vadd.f32 %v1347_v18, %v725_v60  ;;  %v1122_v62 = vpop.f32.mrb[7].mxu0 }
 0xe6b   :  { %737 = vrot.lane.b32.xlu0 %v726_v61, %s1253_s14  ;;  %v729_v1 = vadd.f32 %v726_v61, %v656_v63 }
 0xe6d   :  { %v998_v2 = vmul.f32 -1.442695, %v729_v1 }
 0xe6f   :  { %1232 = vpow2.f32 %v998_v2 }
 0xe79   :  { %v1233_v3 = vpop.eup %1232 }
 0xe7a   :  { %v733_v5 = vadd.f32 1.0, %v1233_v3 }
 0xe7c   :  { %1234 = vrcp.f32 %v733_v5 }
 0xe86   :  { %v1235_v8 = vpop.eup %1234 }
 0xe87   :  { %v747_v9 = vsub.f32 1.0, %v1235_v8  ;;  %v753_v11 = vmul.f32 %v1235_v8, %v649_v58 }
 0xedd   :  { %v738_v6 = vpop.permute.xlu0 %737 }
 0xede   :  { %v740_v4 = vmul.f32 %v1235_v8, %v738_v6 }
 0xee0   :  { %742 = vrot.lane.b32.xlu1 %v740_v4, %s1253_s14 }
 0xf52   :  { %v743_v0 = vpop.permute.xlu1 %742 }
 0xf53   :  { %v745_v12 = vadd.f32 %v743_v0, %v656_v63 }
 0xf55   :  { %1236 = vtanh.f32 %v745_v12 }
 0xf5f   :  { %v1237_v7 = vpop.eup %1236 }
 0xf60   :  { %749 = vrot.lane.b32.xlu0 %v1237_v7, %s1254_s3 }
 0xfd2   :  { %v750_v10 = vpop.permute.xlu0 %749 }
 0xfd3   :  { %v752_v13 = vmul.f32 %v750_v10, %v747_v9 }
 0xfd5   :  { %v754_v14 = vadd.f32 %v753_v11, %v752_v13 }
 0xfd7   :  { %756 = vrot.lane.b32.xlu1 %v754_v14, %s1254_s3 }
0x1049   :  { %v757_v15 = vpop.permute.xlu1 %756 }
0x104a   :  { %999 = vst.msk [vmem:[%s1465_s5 + $0xa] sm:$0x3] %vm234_vm3, %v757_v15  ;;  %1132 = vmatmul.mubr.msk.f32.vlgmr.msra.gmra.mrb[6].mxu1 %vm130_vm4, %v757_v15 }
0x111d   :  { %v830_v16 = vpop.f32.mrb[6].mxu1 }
0x111e   :  { %v831_v17 = vadd.f32 %v1347_v18, %v830_v16  ;;  %v1133_v19 = vpop.f32.mrb[7].mxu1 }
0x1120   :  { %842 = vrot.lane.b32.xlu0 %v831_v17, %s1253_s14  ;;  %v834_v21 = vadd.f32 %v831_v17, %v761_v20 }
0x1122   :  { %v1001_v22 = vmul.f32 -1.442695, %v834_v21 }
0x1124   :  { %1238 = vpow2.f32 %v1001_v22 }
0x112e   :  { %v1239_v23 = vpop.eup %1238 }
0x112f   :  { %v838_v24 = vadd.f32 1.0, %v1239_v23 }
0x1131   :  { %1240 = vrcp.f32 %v838_v24 }
0x113b   :  { %v1241_v25 = vpop.eup %1240 }
0x113c   :  { %v852_v31 = vsub.f32 1.0, %v1241_v25  ;;  %v858_v33 = vmul.f32 %v1241_v25, %v754_v14 }
0x1192   :  { %v843_v26 = vpop.permute.xlu0 %842 }
0x1193   :  { %v845_v27 = vmul.f32 %v1241_v25, %v843_v26 }
0x1195   :  { %847 = vrot.lane.b32.xlu1 %v845_v27, %s1253_s14 }
0x1207   :  { %v848_v28 = vpop.permute.xlu1 %847 }
0x1208   :  { %v850_v29 = vadd.f32 %v848_v28, %v761_v20 }
0x120a   :  { %1242 = vtanh.f32 %v850_v29 }
0x1214   :  { %v1243_v30 = vpop.eup %1242 }
0x1215   :  { %854 = vrot.lane.b32.xlu0 %v1243_v30, %s1254_s3 }
0x1287   :  { %v855_v32 = vpop.permute.xlu0 %854 }
0x1288   :  { %v857_v34 = vmul.f32 %v855_v32, %v852_v31 }
0x128a   :  { %v859_v35 = vadd.f32 %v858_v33, %v857_v34 }
0x128c   :  { %861 = vrot.lane.b32.xlu1 %v859_v35, %s1254_s3 }
0x12fe   :  { %v862_v36 = vpop.permute.xlu1 %861 }
0x12ff   :  { %1002 = vst.msk [vmem:[%s1465_s5 + $0xc] sm:$0x3] %vm234_vm3, %v862_v36  ;;  %1143 = vmatmul.mubr.msk.f32.vlgmr.msra.gmra.mrb[8].mxu0 %vm130_vm4, %v862_v36 }
0x13d2   :  { %v935_v37 = vpop.f32.mrb[8].mxu0 }
0x13d3   :  { %v936_v38 = vadd.f32 %v1347_v18, %v935_v37  ;;  %v1144_v39 = vpop.f32.mrb[9].mxu0 }
0x13d5   :  { %947 = vrot.lane.b32.xlu0 %v936_v38, %s1253_s14  ;;  %v939_v41 = vadd.f32 %v936_v38, %v866_v40 }
0x13d7   :  { %v1004_v42 = vmul.f32 -1.442695, %v939_v41 }
0x13d9   :  { %1244 = vpow2.f32 %v1004_v42 }
0x13e3   :  { %v1245_v43 = vpop.eup %1244 }
0x13e4   :  { %v943_v44 = vadd.f32 1.0, %v1245_v43 }
0x13e6   :  { %1246 = vrcp.f32 %v943_v44 }
0x13f0   :  { %v1247_v45 = vpop.eup %1246 }
0x13f1   :  { %v957_v18 = vsub.f32 1.0, %v1247_v45  ;;  %v963_v52 = vmul.f32 %v1247_v45, %v859_v35 }
0x1447   :  { %v948_v46 = vpop.permute.xlu0 %947 }
0x1448   :  { %v950_v47 = vmul.f32 %v1247_v45, %v948_v46 }
0x144a   :  { %952 = vrot.lane.b32.xlu1 %v950_v47, %s1253_s14 }
0x14bc   :  { %v953_v48 = vpop.permute.xlu1 %952 }
0x14bd   :  { %v955_v49 = vadd.f32 %v953_v48, %v866_v40 }
0x14bf   :  { %1248 = vtanh.f32 %v955_v49 }
0x14c9   :  { %v1249_v50 = vpop.eup %1248 }
0x14ca   :  { %959 = vrot.lane.b32.xlu0 %v1249_v50, %s1254_s3 }
0x153c   :  { %v960_v51 = vpop.permute.xlu0 %959 }
0x153d   :  { %v962_v53 = vmul.f32 %v960_v51, %v957_v18 }
0x153f   :  { %v964_v54 = vadd.f32 %v963_v52, %v962_v53 }
0x1541   :  { %966 = vrot.lane.b32.xlu1 %v964_v54, %s1254_s3 }
0x15b3   :  { %v967_v55 = vpop.permute.xlu1 %966 }
0x15b4   :  { %1005 = vst.msk [vmem:[%s1465_s5 + $0xe] sm:$0x3] %vm234_vm3, %v967_v55  ;;  %971 = vst.msk [vmem:[%s1466_s6] sm:$0x3] %vm234_vm3, %v967_v55 }

// kernel: translator_forward.3
= control target key start
LH: loop header
LB: loop body
LE: loop exit
PB: predicated region body
PF: predicated region fallthrough
CT: control target
= control target key end

     0   :  { %v3170_v3 = vmov 0.0|0.0   ;;  %vm3171_vm0 = vmmov 0   ;;  %v3172_v8 = vmov 0.0   ;;  %vm48_vm1 = vcmask 130048   ;;  %s3638_s0 = inlined_call_operand.vmem [shape: f32[8,16], index: 0, kind: input, shape index: {}]   ;;  %s3639_s1 = inlined_call_operand.vmem [shape: f32[2,32], index: 1, kind: input, shape index: {}]   ;;  %s3640_s2 = inlined_call_operand.vmem [shape: f32[2,8,32], index: 2, kind: input, shape index: {}]   ;;  %s3641_s3 = inlined_call_operand.vmem [shape: f32[16,96], index: 3, kind: input, shape index: {}]   ;;  %s3642_s4 = inlined_call_operand.vmem [shape: f32[32,96], index: 4, kind: input, shape index: {}]   ;;  %s3643_s5 = inlined_call_operand.vmem [shape: f32[1,96], index: 5, kind: input, shape index: {}, may-alias: {5,6}]   ;;  %s3644_s6 = inlined_call_operand.vmem [shape: f32[1,96], index: 6, kind: input, shape index: {}, may-alias: {5,6}]   ;;  %s3645_s7 = inlined_call_operand.vmem [shape: f32[32,128], index: 7, kind: input, shape index: {}]   ;;  %s3646_s8 = inlined_call_operand.vmem [shape: f32[32,128], index: 8, kind: input, shape index: {}]   ;;  %s3647_s9 = inlined_call_operand.vmem [shape: f32[1,128], index: 9, kind: input, shape index: {}]   ;;  %s3648_s10 = inlined_call_operand.vmem [shape: f32[4,2,128], index: 10, kind: output, shape index: {0}]   ;;  %s3649_s11 = inlined_call_operand.hbm [shape: f32[2,32], index: 11, kind: output, shape index: {1}]  }
   0x1   :  { %v39_v0 = vld [vmem:[%s3641_s3] sm:$0xff]  ;;  %v40_v1 = vld [vmem:[%s3641_s3 + $0x8] sm:$0xff]  ;;  %2991 = vmatprep.subr.bf16.mxu0 %v3170_v3  ;;  %2994 = vmatprep.subr.bf16.mxu1 %v3170_v3  ;;  %v126_v6 = vld [vmem:[%s3642_s4 + $0x10] sm:$0xff] }
   0x2   :  { %v124_v2 = vld [vmem:[%s3642_s4] sm:$0xff]  ;;  %v2992_v4 = vpack.c.bf16 %v40_v1, %v39_v0  ;;  %v125_v5 = vld [vmem:[%s3642_s4 + $0x8] sm:$0xff]  ;;  %2776 = vmatprep.mubr.msk.f32.mxu0 %vm3171_vm0, %v3172_v8  ;;  %v127_v9 = vld [vmem:[%s3642_s4 + $0x18] sm:$0xff]  ;;  %2787 = vmatprep.mubr.msk.f32.mxu1 %vm3171_vm0, %v3172_v8 }
   0x3   :  { %v3255_v7 = vpack.c.bf16 %v125_v5, %v124_v2  ;;  %v38_v10 = vld [vmem:[%s3638_s0] sm:$0xff] }
   0x4   :  { %2993 = vmatpush3.bf16.msra.mxu0 %v2992_v4 }
   0x5   :  { %17 = vsyncpa [#allocation4], 0  ;;  %2996 = vmatpush3.bf16.msra.mxu1 %v3255_v7  ;;  %v3268_v11 = vpack.c.bf16 %v127_v9, %v126_v6  ;;  %2790 = vmatprep.subr.mxu0 %v3172_v8  ;;  %v140_v12 = vld [vmem:[%s3639_s1] sm:$0x3]  ;;  %vm148_vm2 = vcmask 261120   ;;  %vm122_vm3 = vcmask 785408   ;;  %v255_v35 = vlaneseq }
   0x6   :  { %2997 = vmatprep.subr.bf16.mxu1 %v3170_v3  ;;  %v2630_v13 = vld [vmem:[%s3643_s5] ss:$0 sm:$0xff]  ;;  %s3173_s1 = smov 64   ;;  %s3174_s5 = smov 96   ;;  %v3176_v33 = vmov 1966171168  }
   0x7   :  { %2777 = vmatmul.mubr.msk.f32.vlgmr.msra.gmra.mrb[0].mxu0 %vm48_vm1, %v38_v10  ;;  %v3288_v17 = vld [vmem:[%s3644_s6] ss:$0 sm:$0xff]  ;;  %s3175_s16 = smov 32   ;;  %v253_v34 = vunpack.c.l.s4 %v3176_v33  ;;  %v256_v38 = vshrl.u32 %v255_v35, 7  ;;  %v3321_v52 = vld [vmem:[%s3640_s2 + $0x8] sm:$0xff]  ;;  %vm436_vm4 = vcmask 57344  }
   0x8   :  { %2792 = vmatprep.mubr.msk.f32.mxu0 %vm3171_vm0, %v3172_v8  ;;  %v3297_v32 = vld [vmem:[%s3640_s2] sm:$0xff]  ;;  %vm459_vm5 = vcmask 64512   ;;  %vm609_vm6 = vcmask 1041409   ;;  %vm2610_vm7 = vcmask 254976   ;;  %vm764_vm8 = vcmask 1041408   ;;  %s3177_s6 = smov [#allocation3]  }
   0x9   :  { %2999 = vmatpush3.bf16.msra.mxu1 %v3268_v11  ;;  %v254_v37 = vunpack.c.0.s8 %v253_v34  ;;  %v3310_v46 = vsub.s32 0, %v256_v38  ;;  %s2620_s15 = sshll.u32 %s3177_s6, 4  ;;  %s2621_s15 = int_to_ptr.vmem [resolvable:$true] %s2620_s15 }
   0xa   :  { %2800 = vmatprep.subr.mxu1 %v3172_v8  ;;  %p3151_p1 = scmp.lt.s32.totalorder %s2621_s15, %s2621_s15 }
   0xb   :  { %v3304_v42 = vsub.s32 %v254_v37, %v256_v38 }
   0xc   :  { %2788 = vmatmul.mubr.msk.f32.vlgmr.msra.gmra.mrb[0].mxu1 %vm148_vm2, %v140_v12 }
   0xd   :  { %2802 = vmatprep.mubr.msk.f32.mxu1 %vm3171_vm0, %v3172_v8  ;;  %2791 = vmatpush3.xpose.msk.msra.mxu0 %vm148_vm2, %v3297_v32 }
   0xe   :  { %2795 = vmatprep.subr.mxu0 %v3172_v8  ;;  %2801 = vmatpush3.msra.mxu1 %v3297_v32 }
   0xf   :  { %3000 = vmatprep.subr.bf16.mxu1 %v3170_v3 }
  0xda   :  { %v118_v14 = vpop.f32.mrb[0].mxu0 }
  0xdb   :  { %v119_v15 = vadd.f32 %v2630_v13, %v118_v14  ;;  %v2778_v16 = vpop.f32.mrb[1].mxu0  ;;  %v131_v13 = vld [vmem:[%s3645_s7] sm:$0xff]  ;;  %v132_v14 = vld [vmem:[%s3645_s7 + $0x8] sm:$0xff] }
  0xdc   :  { %v3346_v16 = vpack.c.bf16 %v132_v14, %v131_v13 }
  0xdd   :  { %123 = vst.msk [vmem:[#allocation2] sm:$0xff] %vm122_vm3, %v119_v15 }
  0xdf   :  { %v218_v18 = vpop.f32.mrb[0].mxu1 }
  0xe0   :  { %v219_v19 = vadd.f32 %v3288_v17, %v218_v18  ;;  %v2789_v20 = vpop.f32.mrb[1].mxu1  ;;  %v133_v18 = vld [vmem:[%s3645_s7 + $0x10] sm:$0xff] }
  0xe1   :  { %v134_v20 = vld [vmem:[%s3645_s7 + $0x18] sm:$0xff] }
  0xe2   :  { %230 = vrot.lane.b32.xlu0 %v219_v19, %s3173_s1 }
  0xe4   :  { %v141_v21 = vld [vmem:[#allocation2] sm:$0x3] }
  0xe5   :  { %v222_v22 = vadd.f32 %v219_v19, %v141_v21 }
  0xe7   :  { %v2634_v23 = vmul.f32 -1.442695, %v222_v22  ;;  %v136_v22 = vld [vmem:[%s3646_s8 + $0x8] sm:$0xff] }
  0xe9   :  { %3074 = vpow2.f32 %v2634_v23 }
  0xf3   :  { %v3075_v24 = vpop.eup %3074 }
  0xf4   :  { %v226_v25 = vadd.f32 1.0, %v3075_v24  ;;  %v3362_v24 = vpack.c.bf16 %v134_v20, %v133_v18 }
  0xf6   :  { %3076 = vrcp.f32 %v226_v25 }
 0x100   :  { %v3077_v26 = vpop.eup %3076 }
 0x101   :  { %v240_v39 = vsub.f32 1.0, %v3077_v26 }
 0x154   :  { %v231_v27 = vpop.permute.xlu0 %230 }
 0x155   :  { %v233_v28 = vmul.f32 %v3077_v26, %v231_v27 }
 0x157   :  { %235 = vrot.lane.b32.xlu0 %v233_v28, %s3173_s1  ;;  %v137_v28 = vld [vmem:[%s3646_s8 + $0x10] sm:$0xff] }
 0x1c9   :  { %v236_v29 = vpop.permute.xlu0 %235 }
 0x1ca   :  { %v238_v30 = vadd.f32 %v236_v29, %v141_v21  ;;  %v135_v21 = vld [vmem:[%s3646_s8] sm:$0xff]  ;;  %v138_v29 = vld [vmem:[%s3646_s8 + $0x18] sm:$0xff] }
 0x1cb   :  { %v3366_v25 = vpack.c.bf16 %v136_v22, %v135_v21 }
 0x1cc   :  { %3078 = vtanh.f32 %v238_v30  ;;  %v3388_v30 = vpack.c.bf16 %v138_v29, %v137_v28 }
 0x1d6   :  { %v3079_v31 = vpop.eup %3078 }
 0x1d7   :  { %242 = vrot.lane.b32.xlu1 %v3079_v31, %s3174_s5 }
 0x1db   :  { %246 = vrot.lane.b32.xlu1 %v140_v12, %s3175_s16  ;;  %s3146_s16 = scalar_lea.vmem %s2621_s15, 32 }
 0x1dc   :  { %p3147_p0 = scmp.ne.s32.totalorder %s2621_s15, %s3146_s16  ;;  %p3152_p2 = scmp.lt.s32.totalorder %s3146_s16, %s3146_s16 }
 0x1de   :  { %p3153_p3 = por %p3152_p2, %p3151_p1 }
 0x1e0   :  { %p3154_p4 = pnand %p3153_p3, %p3147_p0 }
 0x249   :  { %v243_v36 = vpop.permute.xlu1 %242 }
 0x24a   :  { %v245_v41 = vmul.f32 %v243_v36, %v240_v39 }
 0x24d   :  { %v247_v40 = vpop.permute.xlu1 %246 }
 0x24e   :  { %v249_v43 = vmul.f32 %v3077_v26, %v247_v40 }
 0x250   :  { %v3306_v44 = vadd.f32 %v249_v43, %v245_v41 }
 0x252   :  { %v258_v45 = vrot.slane %v3306_v44, %v3304_v42 }
 0x254   :  { %v266_v47 = vrot.slane %v258_v45, %v3304_v42  ;;  %v259_v48 = vcombine.high %v258_v45, %v258_v45 }
 0x256   :  { %v277_v49 = vrot.slane %v266_v47, %v3310_v46  ;;  %v273_v50 = vrot.slane %v259_v48, %v3304_v42 }
 0x258   :  { %278 = vrot.lane.b32.xlu0 %v277_v49, %s3174_s5  ;;  %v358_v51 = vrot.slane %v273_v50, %v3310_v46  ;;  %v779_v49 = vld [vmem:[#allocation2 + $0x2] sm:$0x3] }
 0x25a   :  { %359 = vrot.lane.b32.xlu1 %v358_v51, %s3174_s5 }
 0x2ca   :  { %v279_v53 = vpop.permute.xlu0 %278 }
 0x2cb   :  { %2793 = vmatmul.mubr.msk.f32.vlgmr.msra.gmra.mrb[2].mxu0 %vm148_vm2, %v279_v53 }
 0x2cc   :  { %2796 = vmatpush3.xpose.msk.msra.mxu0 %vm148_vm2, %v3321_v52  ;;  %2797 = vmatprep.mubr.msk.f32.mxu0 %vm3171_vm0, %v3172_v8  ;;  %v360_v54 = vpop.permute.xlu1 %359 }
 0x2cd   :  { %2805 = vmatprep.subr.mxu0 %v3172_v8 }
 0x2cf   :  { %2798 = vmatmul.mubr.msk.f32.vlgmr.msra.gmra.mrb[4].mxu0 %vm148_vm2, %v360_v54 }
 0x2d0   :  { %2806 = vmatpush3.msra.mxu0 %v3321_v52  ;;  %2807 = vmatprep.mubr.msk.f32.mxu0 %vm3171_vm0, %v3172_v8 }
 0x2d1   :  { %3006 = vmatprep.subr.bf16.mxu0 %v3170_v3 }
 0x39e   :  { %v351_v55 = vpop.f32.mrb[2].mxu0 }
 0x39f   :  { %v2794_v56 = vpop.f32.mrb[3].mxu0  ;;  %v437_v57 = vsel %vm436_vm4, %v351_v55, -inf }
 0x3a0   :  { %438 = vmax.xlane.f32.xlu1 %v437_v57 }
 0x3a2   :  { %v432_v58 = vpop.f32.mrb[4].mxu0 }
 0x3a3   :  { %v2799_v59 = vpop.f32.mrb[5].mxu0  ;;  %v440_v60 = vsel %vm436_vm4, %v432_v58, -inf }
 0x3a4   :  { %441 = vmax.xlane.f32.xlu0 %v440_v60 }
 0x3b1   :  { %683 = vrot.lane.b32.xlu1 %v3306_v44, %s3174_s5 }
 0x42d   :  { %v439_v61 = vpop.xlane.xlu1 %438 }
 0x42e   :  { %v443_v62 = vsub.f32 %v351_v55, %v439_v61 }
 0x430   :  { %v445_v1 = vmul.f32 1.442695, %v443_v62 }
 0x431   :  { %v442_v63 = vpop.xlane.xlu0 %441  ;;  %v684_v27 = vpop.permute.xlu1 %683 }
 0x432   :  { %v444_v0 = vsub.f32 %v432_v58, %v442_v63 }
 0x434   :  { %v447_v2 = vmul.f32 1.442695, %v444_v0 }
 0x436   :  { %3080 = vpow2.f32 %v447_v2 }
 0x437   :  { %3082 = vpow2.f32 %v445_v1 }
 0x440   :  { %v3081_v4 = vpop.eup %3080 }
 0x441   :  { %v452_v5 = vsel %vm436_vm4, %v3081_v4, 0.0  ;;  %v3083_v6 = vpop.eup %3082 }
 0x442   :  { %453 = vadd.xlane.f32.xlu0 %v452_v5  ;;  %v449_v9 = vsel %vm436_vm4, %v3083_v6, 0.0 }
 0x446   :  { %450 = vadd.xlane.f32.xlu0 %v449_v9 }
 0x4cf   :  { %v454_v10 = vpop.xlane.xlu0 %453 }
 0x4d0   :  { %3084 = vrcp.f32 %v454_v10 }
 0x4d3   :  { %v451_v12 = vpop.xlane.xlu0 %450 }
 0x4d4   :  { %3086 = vrcp.f32 %v451_v12 }
 0x4da   :  { %v3085_v15 = vpop.eup %3084 }
 0x4db   :  { %v458_v19 = vmul.f32 %v3085_v15, %v3081_v4 }
 0x4dd   :  { %2808 = vmatmul.mubr.msk.f32.vlgmr.msra.gmra.mrb[6].mxu0 %vm459_vm5, %v458_v19 }
 0x4de   :  { %v3087_v23 = vpop.eup %3086  ;;  %3008 = vmatpush3.bf16.msra.mxu0 %v3346_v16  ;;  %2829 = vmatprep.mubr.msk.f32.mxu0 %vm3171_vm0, %v3172_v8 }
 0x4df   :  { %v457_v26 = vmul.f32 %v3087_v23, %v3083_v6  ;;  %3009 = vmatprep.subr.bf16.mxu0 %v3170_v3 }
 0x4e1   :  { %2803 = vmatmul.mubr.msk.f32.vlgmr.msra.gmra.mrb[2].mxu1 %vm459_vm5, %v457_v26 }
 0x4e2   :  { %3011 = vmatpush3.bf16.msra.mxu0 %v3362_v24  ;;  %3002 = vmatpush3.bf16.msra.mxu1 %v3366_v25 }
 0x4e3   :  { %3003 = vmatprep.subr.bf16.mxu1 %v3170_v3  ;;  %2818 = vmatprep.mubr.msk.f32.mxu1 %vm3171_vm0, %v3172_v8 }
 0x4e4   :  { %2843 = vmatprep.subr.mxu0 %v3172_v8 }
 0x4e5   :  { %2830 = vmatmul.mubr.msk.f32.vlgmr.msra.gmra.mrb[8].mxu0 %vm148_vm2, %v684_v27 }
 0x4e6   :  { %2845 = vmatprep.mubr.msk.f32.mxu0 %vm3171_vm0, %v3172_v8  ;;  %3005 = vmatpush3.bf16.msra.mxu1 %v3388_v30 }
 0x4e7   :  { %3012 = vmatprep.subr.bf16.mxu1 %v3170_v3 }
 0x4eb   :  { %2844 = vmatpush3.xpose.msk.msra.mxu0 %vm148_vm2, %v3297_v32 }
 0x4ec   :  { %2848 = vmatprep.subr.mxu0 %v3172_v8 }
 0x5b0   :  { %v602_v31 = vpop.f32.mrb[6].mxu0 }
 0x5b1   :  { %v2809_v33 = vpop.f32.mrb[7].mxu0  ;;  %v608_v34 = vrot.slane %v602_v31, 7 }
 0x5b4   :  { %v529_v35 = vpop.f32.mrb[2].mxu1 }
 0x5b5   :  { %v610_v36 = vsel %vm609_vm6, %v608_v34, %v529_v35  ;;  %v2804_v37 = vpop.f32.mrb[3].mxu1 }
 0x5b6   :  { %2819 = vmatmul.mubr.msk.f32.vlgmr.msra.gmra.mrb[4].mxu1 %vm148_vm2, %v610_v36 }
 0x5b7   :  { %3014 = vmatpush3.bf16.msra.mxu1 %v3255_v7  ;;  %2840 = vmatprep.mubr.msk.f32.mxu1 %vm3171_vm0, %v3172_v8 }
 0x5b8   :  { %v753_v38 = vpop.f32.mrb[8].mxu0  ;;  %3015 = vmatprep.subr.bf16.mxu1 %v3170_v3 }
 0x5b9   :  { %v2831_v39 = vpop.f32.mrb[9].mxu0 }
 0x5bb   :  { %3017 = vmatpush3.bf16.msra.mxu1 %v3268_v11 }
 0x5bc   :  { %2853 = vmatprep.subr.mxu1 %v3172_v8 }
 0x5be   :  { %2841 = vmatmul.mubr.msk.f32.vlgmr.msra.gmra.mrb[6].mxu1 %vm148_vm2, %v684_v27 }
 0x5bf   :  { %2854 = vmatpush3.msra.mxu1 %v3297_v32  ;;  %2855 = vmatprep.mubr.msk.f32.mxu1 %vm3171_vm0, %v3172_v8 }
 0x5c0   :  { %3018 = vmatprep.subr.bf16.mxu1 %v3170_v3 }
 0x689   :  { %v679_v40 = vpop.f32.mrb[4].mxu1 }
 0x68a   :  { %v3405_v41 = vadd.f32 %v753_v38, %v679_v40  ;;  %v2820_v43 = vpop.f32.mrb[5].mxu1 }
 0x691   :  { %v846_v45 = vpop.f32.mrb[6].mxu1 }
 0x692   :  { %v847_v47 = vadd.f32 %v3288_v17, %v846_v45  ;;  %v2842_v48 = vpop.f32.mrb[7].mxu1 }
 0x694   :  { %858 = vrot.lane.b32.xlu0 %v847_v47, %s3173_s1  ;;  %v850_v50 = vadd.f32 %v847_v47, %v779_v49 }
 0x696   :  { %v2645_v51 = vmul.f32 -1.442695, %v850_v50 }
 0x698   :  { %3088 = vpow2.f32 %v2645_v51 }
 0x6a2   :  { %v3089_v53 = vpop.eup %3088 }
 0x6a3   :  { %v854_v54 = vadd.f32 1.0, %v3089_v53 }
 0x6a5   :  { %3090 = vrcp.f32 %v854_v54 }
 0x6af   :  { %v3091_v55 = vpop.eup %3090 }
 0x6b0   :  { %v868_v61 = vsub.f32 1.0, %v3091_v55  ;;  %v874_v63 = vmul.f32 %v3091_v55, %v3306_v44 }
 0x706   :  { %v859_v56 = vpop.permute.xlu0 %858 }
 0x707   :  { %v861_v57 = vmul.f32 %v3091_v55, %v859_v56 }
 0x709   :  { %863 = vrot.lane.b32.xlu1 %v861_v57, %s3173_s1 }
 0x77b   :  { %v864_v58 = vpop.permute.xlu1 %863 }
 0x77c   :  { %v866_v59 = vadd.f32 %v864_v58, %v779_v49 }
 0x77e   :  { %3092 = vtanh.f32 %v866_v59 }
 0x788   :  { %v3093_v60 = vpop.eup %3092 }
 0x789   :  { %870 = vrot.lane.b32.xlu1 %v3093_v60, %s3174_s5 }
 0x7fb   :  { %v871_v62 = vpop.permute.xlu1 %870 }
 0x7fc   :  { %v873_v0 = vmul.f32 %v871_v62, %v868_v61  ;;  %v1389_v61 = vld [vmem:[#allocation2 + $0x4] sm:$0x3] }
 0x7fe   :  { %v3412_v1 = vadd.f32 %v874_v63, %v873_v0 }
 0x800   :  { %v883_v2 = vrot.slane %v3412_v1, %v3304_v42 }
 0x802   :  { %v891_v4 = vrot.slane %v883_v2, %v3304_v42  ;;  %v884_v5 = vcombine.high %v883_v2, %v883_v2 }
 0x804   :  { %v902_v6 = vrot.slane %v891_v4, %v3310_v46  ;;  %v898_v9 = vrot.slane %v884_v5, %v3304_v42 }
 0x806   :  { %903 = vrot.lane.b32.xlu0 %v902_v6, %s3174_s5  ;;  %v980_v10 = vrot.slane %v898_v9, %v3310_v46 }
 0x808   :  { %981 = vrot.lane.b32.xlu1 %v980_v10, %s3174_s5 }
 0x878   :  { %v904_v44 = vpop.permute.xlu0 %903 }
 0x879   :  { %2846 = vmatmul.mubr.msk.f32.vlgmr.msra.gmra.mrb[10].mxu0 %vm148_vm2, %v904_v44 }
 0x87a   :  { %2849 = vmatpush3.xpose.msk.msra.mxu0 %vm148_vm2, %v3321_v52  ;;  %2850 = vmatprep.mubr.msk.f32.mxu0 %vm3171_vm0, %v3172_v8  ;;  %v982_v12 = vpop.permute.xlu1 %981 }
 0x87b   :  { %2858 = vmatprep.subr.mxu0 %v3172_v8 }
 0x87d   :  { %2851 = vmatmul.mubr.msk.f32.vlgmr.msra.gmra.mrb[12].mxu0 %vm148_vm2, %v982_v12 }
 0x87e   :  { %2859 = vmatpush3.msra.mxu0 %v3321_v52  ;;  %2860 = vmatprep.mubr.msk.f32.mxu0 %vm3171_vm0, %v3172_v8 }
 0x87f   :  { %3024 = vmatprep.subr.bf16.mxu0 %v3170_v3 }
 0x94c   :  { %v973_v13 = vpop.f32.mrb[10].mxu0 }
 0x94d   :  { %v2847_v14 = vpop.f32.mrb[11].mxu0  ;;  %v1055_v15 = vsel %vm436_vm4, %v973_v13, -inf }
 0x94e   :  { %1056 = vmax.xlane.f32.xlu1 %v1055_v15 }
 0x950   :  { %v1051_v18 = vpop.f32.mrb[12].mxu0 }
 0x951   :  { %v2852_v19 = vpop.f32.mrb[13].mxu0  ;;  %v1058_v20 = vsel %vm436_vm4, %v1051_v18, -inf }
 0x952   :  { %1059 = vmax.xlane.f32.xlu0 %v1058_v20 }
 0x95f   :  { %1299 = vrot.lane.b32.xlu1 %v3412_v1, %s3174_s5 }
 0x9db   :  { %v1057_v21 = vpop.xlane.xlu1 %1056 }
 0x9dc   :  { %v1061_v22 = vsub.f32 %v973_v13, %v1057_v21 }
 0x9de   :  { %v1063_v27 = vmul.f32 1.442695, %v1061_v22 }
 0x9df   :  { %v1060_v23 = vpop.xlane.xlu0 %1059  ;;  %v1300_v43 = vpop.permute.xlu1 %1299 }
 0x9e0   :  { %v1062_v26 = vsub.f32 %v1051_v18, %v1060_v23 }
 0x9e2   :  { %v1065_v28 = vmul.f32 1.442695, %v1062_v26 }
 0x9e4   :  { %3094 = vpow2.f32 %v1065_v28 }
 0x9e5   :  { %3096 = vpow2.f32 %v1063_v27 }
 0x9ee   :  { %v3095_v29 = vpop.eup %3094 }
 0x9ef   :  { %v1070_v31 = vsel %vm436_vm4, %v3095_v29, 0.0  ;;  %v3097_v33 = vpop.eup %3096 }
 0x9f0   :  { %1071 = vadd.xlane.f32.xlu0 %v1070_v31  ;;  %v1067_v34 = vsel %vm436_vm4, %v3097_v33, 0.0 }
 0x9f4   :  { %1068 = vadd.xlane.f32.xlu0 %v1067_v34 }
 0xa7d   :  { %v1072_v35 = vpop.xlane.xlu0 %1071 }
 0xa7e   :  { %3098 = vrcp.f32 %v1072_v35 }
 0xa81   :  { %v1069_v36 = vpop.xlane.xlu0 %1068 }
 0xa82   :  { %3100 = vrcp.f32 %v1069_v36 }
 0xa88   :  { %v3099_v37 = vpop.eup %3098 }
 0xa89   :  { %v1076_v38 = vmul.f32 %v3099_v37, %v3095_v29 }
 0xa8b   :  { %2861 = vmatmul.mubr.msk.f32.vlgmr.msra.gmra.mrb[14].mxu0 %vm459_vm5, %v1076_v38 }
 0xa8c   :  { %v3101_v39 = vpop.eup %3100  ;;  %3026 = vmatpush3.bf16.msra.mxu0 %v3346_v16  ;;  %2882 = vmatprep.mubr.msk.f32.mxu0 %vm3171_vm0, %v3172_v8 }
 0xa8d   :  { %v1075_v40 = vmul.f32 %v3101_v39, %v3097_v33  ;;  %3027 = vmatprep.subr.bf16.mxu0 %v3170_v3 }
 0xa8f   :  { %2856 = vmatmul.mubr.msk.f32.vlgmr.msra.gmra.mrb[8].mxu1 %vm459_vm5, %v1075_v40 }
 0xa90   :  { %3029 = vmatpush3.bf16.msra.mxu0 %v3362_v24  ;;  %3020 = vmatpush3.bf16.msra.mxu1 %v3366_v25 }
 0xa91   :  { %3021 = vmatprep.subr.bf16.mxu1 %v3170_v3  ;;  %2871 = vmatprep.mubr.msk.f32.mxu1 %vm3171_vm0, %v3172_v8 }
 0xa92   :  { %2896 = vmatprep.subr.mxu0 %v3172_v8 }
 0xa93   :  { %2883 = vmatmul.mubr.msk.f32.vlgmr.msra.gmra.mrb[16].mxu0 %vm148_vm2, %v1300_v43 }
 0xa94   :  { %3023 = vmatpush3.bf16.msra.mxu1 %v3388_v30  ;;  %2898 = vmatprep.mubr.msk.f32.mxu0 %vm3171_vm0, %v3172_v8 }
 0xa95   :  { %3030 = vmatprep.subr.bf16.mxu1 %v3170_v3 }
 0xa99   :  { %2897 = vmatpush3.xpose.msk.msra.mxu0 %vm148_vm2, %v3297_v32 }
 0xa9a   :  { %2901 = vmatprep.subr.mxu0 %v3172_v8 }
 0xb5e   :  { %v1219_v45 = vpop.f32.mrb[14].mxu0 }
 0xb5f   :  { %v2862_v47 = vpop.f32.mrb[15].mxu0  ;;  %v1225_v48 = vrot.slane %v1219_v45, 7 }
 0xb62   :  { %v1146_v49 = vpop.f32.mrb[8].mxu1 }
 0xb63   :  { %v1226_v50 = vsel %vm609_vm6, %v1225_v48, %v1146_v49  ;;  %v2857_v51 = vpop.f32.mrb[9].mxu1 }
 0xb64   :  { %2872 = vmatmul.mubr.msk.f32.vlgmr.msra.gmra.mrb[10].mxu1 %vm148_vm2, %v1226_v50 }
 0xb65   :  { %3032 = vmatpush3.bf16.msra.mxu1 %v3255_v7  ;;  %2893 = vmatprep.mubr.msk.f32.mxu1 %vm3171_vm0, %v3172_v8 }
 0xb66   :  { %v1369_v53 = vpop.f32.mrb[16].mxu0  ;;  %3033 = vmatprep.subr.bf16.mxu1 %v3170_v3 }
 0xb67   :  { %v2884_v54 = vpop.f32.mrb[17].mxu0 }
 0xb69   :  { %3035 = vmatpush3.bf16.msra.mxu1 %v3268_v11 }
 0xb6a   :  { %2906 = vmatprep.subr.mxu1 %v3172_v8 }
 0xb6c   :  { %2894 = vmatmul.mubr.msk.f32.vlgmr.msra.gmra.mrb[12].mxu1 %vm148_vm2, %v1300_v43 }
 0xb6d   :  { %2907 = vmatpush3.msra.mxu1 %v3297_v32  ;;  %2908 = vmatprep.mubr.msk.f32.mxu1 %vm3171_vm0, %v3172_v8 }
 0xb6e   :  { %3036 = vmatprep.subr.bf16.mxu1 %v3170_v3 }
 0xc37   :  { %v1295_v55 = vpop.f32.mrb[10].mxu1 }
 0xc38   :  { %v3472_v56 = vadd.f32 %v1369_v53, %v1295_v55  ;;  %v2873_v57 = vpop.f32.mrb[11].mxu1 }
 0xc3f   :  { %v1456_v58 = vpop.f32.mrb[12].mxu1 }
 0xc40   :  { %v1457_v59 = vadd.f32 %v3288_v17, %v1456_v58  ;;  %v2895_v60 = vpop.f32.mrb[13].mxu1 }
 0xc42   :  { %1468 = vrot.lane.b32.xlu0 %v1457_v59, %s3173_s1  ;;  %v1460_v62 = vadd.f32 %v1457_v59, %v1389_v61 }
 0xc44   :  { %v2656_v63 = vmul.f32 -1.442695, %v1460_v62 }
 0xc46   :  { %3102 = vpow2.f32 %v2656_v63 }
 0xc50   :  { %v3103_v0 = vpop.eup %3102 }
 0xc51   :  { %v1464_v2 = vadd.f32 1.0, %v3103_v0 }
 0xc53   :  { %3104 = vrcp.f32 %v1464_v2 }
 0xc5d   :  { %v3105_v4 = vpop.eup %3104 }
 0xc5e   :  { %v1478_v12 = vsub.f32 1.0, %v3105_v4  ;;  %v1484_v14 = vmul.f32 %v3105_v4, %v3412_v1 }
 0xcb4   :  { %v1469_v5 = vpop.permute.xlu0 %1468 }
 0xcb5   :  { %v1471_v6 = vmul.f32 %v3105_v4, %v1469_v5 }
 0xcb7   :  { %1473 = vrot.lane.b32.xlu1 %v1471_v6, %s3173_s1 }
 0xd29   :  { %v1474_v9 = vpop.permute.xlu1 %1473 }
 0xd2a   :  { %v1476_v10 = vadd.f32 %v1474_v9, %v1389_v61 }
 0xd2c   :  { %3106 = vtanh.f32 %v1476_v10 }
 0xd36   :  { %v3107_v44 = vpop.eup %3106 }
 0xd37   :  { %1480 = vrot.lane.b32.xlu1 %v3107_v44, %s3174_s5 }
 0xda9   :  { %v1481_v13 = vpop.permute.xlu1 %1480 }
 0xdaa   :  { %v1483_v15 = vmul.f32 %v1481_v13, %v1478_v12 }
 0xdac   :  { %v3479_v18 = vadd.f32 %v1484_v14, %v1483_v15 }
 0xdae   :  { %v1493_v19 = vrot.slane %v3479_v18, %v3304_v42 }
 0xdb0   :  { %v1501_v20 = vrot.slane %v1493_v19, %v3304_v42  ;;  %v1494_v21 = vcombine.high %v1493_v19, %v1493_v19 }
 0xdb2   :  { %v1512_v22 = vrot.slane %v1501_v20, %v3310_v46  ;;  %v1508_v23 = vrot.slane %v1494_v21, %v3304_v42 }
 0xdb4   :  { %1513 = vrot.lane.b32.xlu0 %v1512_v22, %s3174_s5  ;;  %v1590_v26 = vrot.slane %v1508_v23, %v3310_v46 }
 0xdb6   :  { %1591 = vrot.lane.b32.xlu1 %v1590_v26, %s3174_s5 }
 0xe26   :  { %v1514_v1 = vpop.permute.xlu0 %1513 }
 0xe27   :  { %2899 = vmatmul.mubr.msk.f32.vlgmr.msra.gmra.mrb[18].mxu0 %vm148_vm2, %v1514_v1 }
 0xe28   :  { %2902 = vmatpush3.xpose.msk.msra.mxu0 %vm148_vm2, %v3321_v52  ;;  %2903 = vmatprep.mubr.msk.f32.mxu0 %vm3171_vm0, %v3172_v8  ;;  %v1592_v27 = vpop.permute.xlu1 %1591 }
 0xe29   :  { %2911 = vmatprep.subr.mxu0 %v3172_v8 }
 0xe2b   :  { %2904 = vmatmul.mubr.msk.f32.vlgmr.msra.gmra.mrb[20].mxu0 %vm148_vm2, %v1592_v27 }
 0xe2c   :  { %2912 = vmatpush3.msra.mxu0 %v3321_v52  ;;  %2913 = vmatprep.mubr.msk.f32.mxu0 %vm3171_vm0, %v3172_v8 }
 0xe2d   :  { %3042 = vmatprep.subr.bf16.mxu0 %v3170_v3 }
 0xefa   :  { %v1583_v28 = vpop.f32.mrb[18].mxu0 }
 0xefb   :  { %v2900_v29 = vpop.f32.mrb[19].mxu0  ;;  %v1665_v31 = vsel %vm436_vm4, %v1583_v28, -inf }
 0xefc   :  { %1666 = vmax.xlane.f32.xlu1 %v1665_v31 }
 0xefe   :  { %v1661_v33 = vpop.f32.mrb[20].mxu0 }
 0xeff   :  { %v2905_v34 = vpop.f32.mrb[21].mxu0  ;;  %v1668_v35 = vsel %vm436_vm4, %v1661_v33, -inf }
 0xf00   :  { %1669 = vmax.xlane.f32.xlu0 %v1668_v35 }
 0xf0d   :  { %1909 = vrot.lane.b32.xlu1 %v3479_v18, %s3174_s5 }
 0xf89   :  { %v1667_v36 = vpop.xlane.xlu1 %1666 }
 0xf8a   :  { %v1671_v37 = vsub.f32 %v1583_v28, %v1667_v36 }
 0xf8c   :  { %v1673_v40 = vmul.f32 1.442695, %v1671_v37 }
 0xf8d   :  { %v1670_v38 = vpop.xlane.xlu0 %1669  ;;  %v1910_v58 = vpop.permute.xlu1 %1909 }
 0xf8e   :  { %v1672_v39 = vsub.f32 %v1661_v33, %v1670_v38 }
 0xf90   :  { %v1675_v43 = vmul.f32 1.442695, %v1672_v39 }
 0xf92   :  { %3108 = vpow2.f32 %v1675_v43 }
 0xf93   :  { %3110 = vpow2.f32 %v1673_v40 }
 0xf9c   :  { %v3109_v45 = vpop.eup %3108 }
 0xf9d   :  { %v1680_v47 = vsel %vm436_vm4, %v3109_v45, 0.0  ;;  %v3111_v48 = vpop.eup %3110 }
 0xf9e   :  { %1681 = vadd.xlane.f32.xlu0 %v1680_v47  ;;  %v1677_v49 = vsel %vm436_vm4, %v3111_v48, 0.0 }
 0xfa2   :  { %1678 = vadd.xlane.f32.xlu0 %v1677_v49 }
0x102b   :  { %v1682_v50 = vpop.xlane.xlu0 %1681 }
0x102c   :  { %3112 = vrcp.f32 %v1682_v50 }
0x102f   :  { %v1679_v51 = vpop.xlane.xlu0 %1678 }
0x1030   :  { %3114 = vrcp.f32 %v1679_v51 }
0x1036   :  { %v3113_v53 = vpop.eup %3112 }
0x1037   :  { %v1686_v54 = vmul.f32 %v3113_v53, %v3109_v45 }
0x1039   :  { %2914 = vmatmul.mubr.msk.f32.vlgmr.msra.gmra.mrb[22].mxu0 %vm459_vm5, %v1686_v54 }
0x103a   :  { %v3115_v55 = vpop.eup %3114  ;;  %3044 = vmatpush3.bf16.msra.mxu0 %v3346_v16  ;;  %2935 = vmatprep.mubr.msk.f32.mxu0 %vm3171_vm0, %v3172_v8 }
0x103b   :  { %v1685_v57 = vmul.f32 %v3115_v55, %v3111_v48  ;;  %3045 = vmatprep.subr.bf16.mxu0 %v3170_v3 }
0x103d   :  { %2909 = vmatmul.mubr.msk.f32.vlgmr.msra.gmra.mrb[14].mxu1 %vm459_vm5, %v1685_v57  ;;  %v3571_v57 = vld [vmem:[%s3647_s9] ss:$0 sm:$0xff] }
0x103e   :  { %3047 = vmatpush3.bf16.msra.mxu0 %v3362_v24  ;;  %3038 = vmatpush3.bf16.msra.mxu1 %v3366_v25 }
0x103f   :  { %3039 = vmatprep.subr.bf16.mxu1 %v3170_v3  ;;  %2924 = vmatprep.mubr.msk.f32.mxu1 %vm3171_vm0, %v3172_v8 }
0x1040   :  { %2949 = vmatprep.subr.mxu0 %v3172_v8 }
0x1041   :  { %2936 = vmatmul.mubr.msk.f32.vlgmr.msra.gmra.mrb[24].mxu0 %vm148_vm2, %v1910_v58 }
0x1042   :  { %3041 = vmatpush3.bf16.msra.mxu1 %v3388_v30  ;;  %2951 = vmatprep.mubr.msk.f32.mxu0 %vm3171_vm0, %v3172_v8 }
0x1043   :  { %3048 = vmatprep.subr.bf16.mxu1 %v3170_v3 }
0x1047   :  { %2950 = vmatpush3.xpose.msk.msra.mxu0 %vm148_vm2, %v3297_v32 }
0x1048   :  { %2954 = vmatprep.subr.mxu0 %v3172_v8 }
0x110c   :  { %v1829_v59 = vpop.f32.mrb[22].mxu0 }
0x110d   :  { %v2915_v60 = vpop.f32.mrb[23].mxu0  ;;  %v1835_v61 = vrot.slane %v1829_v59, 7 }
0x110e   :  { %v3578_v60 = vadd.f32 %v3571_v57, %v3472_v56 }
0x1110   :  { %v1756_v62 = vpop.f32.mrb[14].mxu1 }
0x1111   :  { %v1836_v63 = vsel %vm609_vm6, %v1835_v61, %v1756_v62  ;;  %v2910_v0 = vpop.f32.mrb[15].mxu1 }
0x1112   :  { %2925 = vmatmul.mubr.msk.f32.vlgmr.msra.gmra.mrb[16].mxu1 %vm148_vm2, %v1836_v63  ;;  %v1374_v63 = vsel %vm764_vm8, %v3578_v60, -inf }
0x1113   :  { %3050 = vmatpush3.bf16.msra.mxu1 %v3255_v7  ;;  %2946 = vmatprep.mubr.msk.f32.mxu1 %vm3171_vm0, %v3172_v8 }
0x1114   :  { %v1979_v2 = vpop.f32.mrb[24].mxu0  ;;  %3051 = vmatprep.subr.bf16.mxu1 %v3170_v3 }
0x1115   :  { %v2937_v4 = vpop.f32.mrb[25].mxu0 }
0x1117   :  { %3053 = vmatpush3.bf16.msra.mxu1 %v3268_v11  ;;  %v1999_v11 = vld [vmem:[#allocation2 + $0x6] sm:$0x3] }
0x1118   :  { %2959 = vmatprep.subr.mxu1 %v3172_v8 }
0x111a   :  { %2947 = vmatmul.mubr.msk.f32.vlgmr.msra.gmra.mrb[18].mxu1 %vm148_vm2, %v1910_v58  ;;  %v763_v58 = vadd.f32 %v3571_v57, %v3405_v41 }
0x111b   :  { %2960 = vmatpush3.msra.mxu1 %v3297_v32  ;;  %2961 = vmatprep.mubr.msk.f32.mxu1 %vm3171_vm0, %v3172_v8 }
0x111c   :  { %3054 = vmatprep.subr.bf16.mxu1 %v3170_v3  ;;  %v765_v61 = vsel %vm764_vm8, %v763_v58, -inf }
0x11e5   :  { %v1905_v7 = vpop.f32.mrb[16].mxu1 }
0x11e6   :  { %v3539_v5 = vadd.f32 %v1979_v2, %v1905_v7  ;;  %v2926_v6 = vpop.f32.mrb[17].mxu1 }
0x11e8   :  { %v3583_v62 = vadd.f32 %v3571_v57, %v3539_v5 }
0x11ea   :  { %v1984_v41 = vsel %vm764_vm8, %v3583_v62, -inf }
0x11ed   :  { %v2066_v9 = vpop.f32.mrb[18].mxu1 }
0x11ee   :  { %v2067_v10 = vadd.f32 %v3288_v17, %v2066_v9  ;;  %v2948_v44 = vpop.f32.mrb[19].mxu1 }
0x11f0   :  { %2078 = vrot.lane.b32.xlu0 %v2067_v10, %s3173_s1  ;;  %v2070_v12 = vadd.f32 %v2067_v10, %v1999_v11 }
0x11f2   :  { %v2667_v13 = vmul.f32 -1.442695, %v2070_v12 }
0x11f4   :  { %3116 = vpow2.f32 %v2667_v13 }
0x11fe   :  { %v3117_v32 = vpop.eup %3116 }
0x11ff   :  { %v2074_v14 = vadd.f32 1.0, %v3117_v32 }
0x1201   :  { %3118 = vrcp.f32 %v2074_v14 }
0x120b   :  { %v3119_v15 = vpop.eup %3118 }
0x120c   :  { %v2088_v17 = vsub.f32 1.0, %v3119_v15  ;;  %v2094_v1 = vmul.f32 %v3119_v15, %v3479_v18 }
0x1262   :  { %v2079_v19 = vpop.permute.xlu0 %2078 }
0x1263   :  { %v2081_v20 = vmul.f32 %v3119_v15, %v2079_v19 }
0x1265   :  { %2083 = vrot.lane.b32.xlu1 %v2081_v20, %s3173_s1 }
0x12d7   :  { %v2084_v21 = vpop.permute.xlu1 %2083 }
0x12d8   :  { %v2086_v22 = vadd.f32 %v2084_v21, %v1999_v11 }
0x12da   :  { %3120 = vtanh.f32 %v2086_v22 }
0x12e4   :  { %v3121_v23 = vpop.eup %3120 }
0x12e5   :  { %2090 = vrot.lane.b32.xlu1 %v3121_v23, %s3174_s5 }
0x1357   :  { %v2091_v26 = vpop.permute.xlu1 %2090 }
0x1358   :  { %v2093_v27 = vmul.f32 %v2091_v26, %v2088_v17 }
0x135a   :  { %v2095_v28 = vadd.f32 %v2094_v1, %v2093_v27 }
0x135c   :  { %v2103_v29 = vrot.slane %v2095_v28, %v3304_v42 }
0x135e   :  { %v2104_v31 = vcombine.high %v2103_v29, %v2103_v29  ;;  %v2111_v33 = vrot.slane %v2103_v29, %v3304_v42 }
0x1360   :  { %v2122_v34 = vrot.slane %v2111_v33, %v3310_v46  ;;  %v2118_v35 = vrot.slane %v2104_v31, %v3304_v42 }
0x1362   :  { %2123 = vrot.lane.b32.xlu0 %v2122_v34, %s3174_s5  ;;  %v2200_v36 = vrot.slane %v2118_v35, %v3310_v46 }
0x1364   :  { %2201 = vrot.lane.b32.xlu1 %v2200_v36, %s3174_s5 }
0x13d4   :  { %v2124_v37 = vpop.permute.xlu0 %2123 }
0x13d5   :  { %2952 = vmatmul.mubr.msk.f32.vlgmr.msra.gmra.mrb[26].mxu0 %vm148_vm2, %v2124_v37 }
0x13d6   :  { %2955 = vmatpush3.xpose.msk.msra.mxu0 %vm148_vm2, %v3321_v52  ;;  %2956 = vmatprep.mubr.msk.f32.mxu0 %vm3171_vm0, %v3172_v8  ;;  %v2202_v18 = vpop.permute.xlu1 %2201 }
0x13d7   :  { %2964 = vmatprep.subr.mxu0 %v3172_v8 }
0x13d9   :  { %2957 = vmatmul.mubr.msk.f32.vlgmr.msra.gmra.mrb[28].mxu0 %vm148_vm2, %v2202_v18 }
0x13da   :  { %2965 = vmatpush3.msra.mxu0 %v3321_v52  ;;  %2966 = vmatprep.mubr.msk.f32.mxu0 %vm3171_vm0, %v3172_v8 }
0x13db   :  { %3060 = vmatprep.subr.bf16.mxu0 %v3170_v3 }
0x14a8   :  { %v2193_v42 = vpop.f32.mrb[26].mxu0 }
0x14a9   :  { %v2953_v46 = vpop.f32.mrb[27].mxu0  ;;  %v2275_v38 = vsel %vm436_vm4, %v2193_v42, -inf }
0x14aa   :  { %2276 = vmax.xlane.f32.xlu1 %v2275_v38 }
0x14ac   :  { %v2271_v39 = vpop.f32.mrb[28].mxu0 }
0x14ad   :  { %v2958_v40 = vpop.f32.mrb[29].mxu0  ;;  %v2278_v43 = vsel %vm436_vm4, %v2271_v39, -inf }
0x14ae   :  { %2279 = vmax.xlane.f32.xlu0 %v2278_v43 }
0x14bb   :  { %2519 = vrot.lane.b32.xlu1 %v2095_v28, %s3174_s5 }
0x1537   :  { %v2277_v45 = vpop.xlane.xlu1 %2276 }
0x1538   :  { %v2281_v52 = vsub.f32 %v2193_v42, %v2277_v45 }
0x153a   :  { %v2283_v50 = vmul.f32 1.442695, %v2281_v52 }
0x153b   :  { %v2520_v47 = vpop.permute.xlu1 %2519  ;;  %v2280_v48 = vpop.xlane.xlu0 %2279 }
0x153c   :  { %v2282_v49 = vsub.f32 %v2271_v39, %v2280_v48  ;;  %2611 = vst.msk [vmem:[#allocation3] sm:$0x3] %vm2610_vm7, %v2520_v47 }
0x153e   :  { %v2285_v51 = vmul.f32 1.442695, %v2282_v49 }
0x1540   :  { %3122 = vpow2.f32 %v2285_v51 }
0x1541   :  { %3124 = vpow2.f32 %v2283_v50 }
0x154a   :  { %v3123_v53 = vpop.eup %3122 }
0x154b   :  { %v2290_v54 = vsel %vm436_vm4, %v3123_v53, 0.0  ;;  %v3125_v55 = vpop.eup %3124 }
0x154c   :  { %2291 = vadd.xlane.f32.xlu0 %v2290_v54  ;;  %v2287_v59 = vsel %vm436_vm4, %v3125_v55, 0.0 }
0x1550   :  { %2288 = vadd.xlane.f32.xlu0 %v2287_v59 }
0x1554   :  { %766 = vmax.xlane.f32.xlu0 %v765_v61 }
0x1558   :  { %1375 = vmax.xlane.f32.xlu0 %v1374_v63 }
0x155c   :  { %1985 = vmax.xlane.f32.xlu0 %v1984_v41 }
0x15d9   :  { %v2292_v0 = vpop.xlane.xlu0 %2291 }
0x15da   :  { %3126 = vrcp.f32 %v2292_v0 }
0x15dd   :  { %v2289_v2 = vpop.xlane.xlu0 %2288 }
0x15de   :  { %3128 = vrcp.f32 %v2289_v2 }
0x15e1   :  { %v767_v56 = vpop.xlane.xlu0 %766 }
0x15e2   :  { %v768_v4 = vsub.f32 %v763_v58, %v767_v56 }
0x15e4   :  { %v3127_v7 = vpop.eup %3126  ;;  %v769_v6 = vmul.f32 1.442695, %v768_v4 }
0x15e5   :  { %v2296_v9 = vmul.f32 %v3127_v7, %v3123_v53  ;;  %v1376_v21 = vpop.xlane.xlu0 %1375 }
0x15e6   :  { %3130 = vpow2.f32 %v769_v6  ;;  %v1377_v22 = vsub.f32 %v3578_v60, %v1376_v21 }
0x15e7   :  { %2967 = vmatmul.mubr.msk.f32.vlgmr.msra.gmra.mrb[30].mxu0 %vm459_vm5, %v2296_v9 }
0x15e8   :  { %v3129_v5 = vpop.eup %3128  ;;  %3062 = vmatpush3.bf16.msra.mxu0 %v3346_v16  ;;  %2988 = vmatprep.mubr.msk.f32.mxu0 %vm3171_vm0, %v3172_v8  ;;  %v1378_v17 = vmul.f32 1.442695, %v1377_v22 }
0x15e9   :  { %v2295_v10 = vmul.f32 %v3129_v5, %v3125_v55  ;;  %3063 = vmatprep.subr.bf16.mxu0 %v3170_v3  ;;  %v1986_v23 = vpop.xlane.xlu0 %1985 }
0x15ea   :  { %v1987_v26 = vsub.f32 %v3583_v62, %v1986_v23 }
0x15eb   :  { %2962 = vmatmul.mubr.msk.f32.vlgmr.msra.gmra.mrb[20].mxu1 %vm459_vm5, %v2295_v10 }
0x15ec   :  { %3065 = vmatpush3.bf16.msra.mxu0 %v3362_v24  ;;  %3056 = vmatpush3.bf16.msra.mxu1 %v3366_v25  ;;  %v1988_v1 = vmul.f32 1.442695, %v1987_v26 }
0x15ed   :  { %3057 = vmatprep.subr.bf16.mxu1 %v3170_v3  ;;  %2977 = vmatprep.mubr.msk.f32.mxu1 %vm3171_vm0, %v3172_v8 }
0x15ef   :  { %2989 = vmatmul.mubr.msk.f32.vlgmr.msra.gmra.mrb[32].mxu0 %vm148_vm2, %v2520_v47 }
0x15f0   :  { %v3131_v16 = vpop.eup %3130  ;;  %3059 = vmatpush3.bf16.msra.mxu1 %v3388_v30 }
0x15f1   :  { %v771_v44 = vsel %vm764_vm8, %v3131_v16, 0.0 }
0x15f2   :  { %772 = vadd.xlane.f32.xlu1 %v771_v44 }
0x167f   :  { %v773_v11 = vpop.xlane.xlu1 %772 }
0x1680   :  { %3132 = vlog2.f32 %v773_v11 }
0x1681   :  { %3134 = vpow2.f32 %v1378_v17 }
0x1682   :  { %3136 = vpow2.f32 %v1988_v1 }
0x168a   :  { %v3133_v12 = vpop.eup %3132 }
0x168b   :  { %v775_v13 = vmul.f32 0.6931472, %v3133_v12  ;;  %v3135_v34 = vpop.eup %3134 }
0x168c   :  { %v1380_v35 = vsel %vm764_vm8, %v3135_v34, 0.0  ;;  %v3137_v36 = vpop.eup %3136 }
0x168d   :  { %v776_v24 = vadd.f32 %v775_v13, %v767_v56  ;;  %v1990_v37 = vsel %vm764_vm8, %v3137_v36, 0.0 }
0x168f   :  { %v777_v32 = vsub.f32 %v763_v58, %v776_v24 }
0x1691   :  { %778 = vst [vmem:[%s3648_s10] sm:$0x3] %v777_v32 }
0x16ba   :  { %v2439_v3 = vpop.f32.mrb[30].mxu0 }
0x16bb   :  { %v2968_v8 = vpop.f32.mrb[31].mxu0  ;;  %v2445_v25 = vrot.slane %v2439_v3, 7 }
0x16be   :  { %v2366_v14 = vpop.f32.mrb[20].mxu1 }
0x16bf   :  { %v2446_v15 = vsel %vm609_vm6, %v2445_v25, %v2366_v14  ;;  %v2963_v30 = vpop.f32.mrb[21].mxu1 }
0x16c0   :  { %2978 = vmatmul.mubr.msk.f32.vlgmr.msra.gmra.mrb[22].mxu1 %vm148_vm2, %v2446_v15 }
0x16c2   :  { %v2589_v19 = vpop.f32.mrb[32].mxu0 }
0x16c3   :  { %v2990_v20 = vpop.f32.mrb[33].mxu0 }
0x1793   :  { %v2515_v27 = vpop.f32.mrb[22].mxu1 }
0x1794   :  { %v2590_v28 = vadd.f32 %v2589_v19, %v2515_v27  ;;  %v2979_v29 = vpop.f32.mrb[23].mxu1 }
0x1796   :  { %v2593_v31 = vadd.f32 %v3571_v57, %v2590_v28 }
0x1798   :  { %v2594_v33 = vsel %vm764_vm8, %v2593_v31, -inf }
0x1799   :  { %2595 = vmax.xlane.f32.xlu0 %v2594_v33 }
0x179d   :  { %1381 = vadd.xlane.f32.xlu0 %v1380_v35 }
0x17a1   :  { %1991 = vadd.xlane.f32.xlu0 %v1990_v37 }
0x1826   :  { %v2596_v18 = vpop.xlane.xlu0 %2595 }
0x1827   :  { %v2597_v42 = vsub.f32 %v2593_v31, %v2596_v18 }
0x1829   :  { %v2598_v46 = vmul.f32 1.442695, %v2597_v42 }
0x182a   :  { %v1382_v38 = vpop.xlane.xlu0 %1381 }
0x182b   :  { %3138 = vpow2.f32 %v2598_v46 }
0x182c   :  { %3140 = vlog2.f32 %v1382_v38 }
0x182e   :  { %v1992_v39 = vpop.xlane.xlu0 %1991 }
0x182f   :  { %3142 = vlog2.f32 %v1992_v39 }
0x1835   :  { %v3139_v40 = vpop.eup %3138 }
0x1836   :  { %v3141_v43 = vpop.eup %3140  ;;  %v2600_v45 = vsel %vm764_vm8, %v3139_v40, 0.0 }
0x1837   :  { %v1384_v52 = vmul.f32 0.6931472, %v3141_v43  ;;  %2601 = vadd.xlane.f32.xlu0 %v2600_v45 }
0x1839   :  { %v3143_v47 = vpop.eup %3142  ;;  %v1385_v48 = vadd.f32 %v1384_v52, %v1376_v21 }
0x183a   :  { %v1994_v49 = vmul.f32 0.6931472, %v3143_v47 }
0x183b   :  { %v1386_v50 = vsub.f32 %v3578_v60, %v1385_v48 }
0x183c   :  { %v1995_v51 = vadd.f32 %v1994_v49, %v1986_v23 }
0x183d   :  { %2654 = vst [vmem:[%s3648_s10 + $0x2] sm:$0x3] %v1386_v50 }
0x183e   :  { %v1996_v53 = vsub.f32 %v3583_v62, %v1995_v51 }
0x1840   :  { %2665 = vst [vmem:[%s3648_s10 + $0x4] sm:$0x3] %v1996_v53 }
0x1841   :  { %3157 = shalt.err (!%p3154_p4)
}
0x1842   :  { %s3158_s2 = scalar_lea.hbm %s3649_s11, 32 }
0x1843   :  { %p3159_p5 = scmp.ne.s32.totalorder %s3649_s11, %s3158_s2  ;;  %p3162_p6 = scmp.lt.u32.totalorder %s3158_s2, %s3649_s11 }
0x1845   :  { %p3164_p7 = pnand %p3162_p6, %p3159_p5 }
0x1847   :  { %3167 = shalt.err (!%p3164_p7)
}
0x1848   :  { %2623 = dma.vmem_to_hbm [thread:$0]  %s2621_s15, 32, %s3649_s11, [#allocation4]  }
0x18c4   :  { %v2602_v54 = vpop.xlane.xlu0 %2601 }
0x18c5   :  { %3144 = vlog2.f32 %v2602_v54 }
0x18cf   :  { %v3145_v55 = vpop.eup %3144 }
0x18d0   :  { %v2604_v57 = vmul.f32 0.6931472, %v3145_v55 }
0x18d2   :  { %v2605_v58 = vadd.f32 %v2604_v57, %v2596_v18 }
0x18d4   :  { %v2606_v59 = vsub.f32 %v2593_v31, %v2605_v58 }
0x18d6   :  { %2676 = vst [vmem:[%s3648_s10 + $0x6] sm:$0x3] %v2606_v59 }
0x18d7   :  { %3168 = dma.done.wait [#allocation4], 32  }
0x18d8   :  { %3169 = vsyncadd [#allocation4], 4294967264 }
0x18d9   :  { %2629 = vsyncpa [#allocation4], 1 }

</bundles_post_ra>
